<compile_context>
chip_gen: v7x
topology: tpu7x:2x2x1
jax: 0.10.0
libtpu: 0.0.40
codegen_flags: <defaults>
</compile_context>

<pallas_src>
import functools

import jax
import jax.numpy as jnp
from jax.experimental import pallas as pl
from jax.experimental.pallas import tpu as pltpu


def _make_fused_kernel(plan, eps: float):
    """plan: tuple per MLP block of (linear_layers, ln_info) where
         linear_layers = ((out_dim, bias_row), ...)
         ln_info       = None or (gamma_row, beta_row, dim)
    Rows index into the packed (n_vec, max_width) f32 vector-parameter array."""

    def kernel(x_ref, vec_ref, *rest):
        out_ref = rest[-1]
        w_refs = rest[:-1]

        h = x_ref[...].astype(jnp.float32)
        wi = 0
        for lin_layers, ln in plan:
            for out_dim, b_row in lin_layers:
                w = w_refs[wi][...]                       # compute dtype (bf16 default)
                wi += 1
                b = vec_ref[b_row:b_row + 1, :out_dim]    # (1, out_dim) f32, static slice
                # MXU matmul with f32 accumulation.
                h = jnp.dot(h.astype(w.dtype), w,
                            preferred_element_type=jnp.float32) + b
            if ln is not None:
                g_row, bt_row, d = ln
                gamma = vec_ref[g_row:g_row + 1, :d]
                beta = vec_ref[bt_row:bt_row + 1, :d]
                # Two-pass LayerNorm in f32 (numerically safer than E[x^2]-mean^2);
                # rsqrt goes to the EUP slot.
                mean = jnp.mean(h, axis=-1, keepdims=True)
                centered = h - mean
                var = jnp.mean(centered * centered, axis=-1, keepdims=True)
                h = centered * jax.lax.rsqrt(var + eps) * gamma + beta
        out_ref[...] = h.astype(out_ref.dtype)

    return kernel


def prepare_stacked_mlp_params(params, compute_dtype=jnp.bfloat16):
    """One-time preprocessing (hoisted out of the per-call path).

    params: list of (ws, bs, ln) per block, where
              ws: list of (in_l, out_l) f32 weights (already transposed from PyTorch)
              bs: list of (1, out_l) or (out_l,) f32 biases
              ln: None, or (gamma, beta) each of size D
    Returns (plan, packed_vecs, weights):
      plan        static structure consumed by the kernel
      packed_vecs (n_vec, max_width) f32, all biases/gamma/beta packed row-wise
      weights     tuple of weight arrays already cast to compute_dtype
    """
    weights = []
    vec_rows = []
    plan = []

    def add_vec(v):
        vec_rows.append(jnp.asarray(v, jnp.float32).reshape(-1))
        return len(vec_rows) - 1

    for ws, bs, ln in params:
        lin = []
        for w, b in zip(ws, bs):
            w = jnp.asarray(w).astype(compute_dtype)
            weights.append(w)
            lin.append((int(w.shape[1]), add_vec(b)))
        if ln is not None:
            gamma, beta = ln
            d = int(jnp.asarray(gamma).size)
            ln_info = (add_vec(gamma), add_vec(beta), d)
        else:
            ln_info = None
        plan.append((tuple(lin), ln_info))

    max_w = max(int(r.shape[0]) for r in vec_rows)
    packed_vecs = jnp.stack(
        [jnp.pad(r, (0, max_w - int(r.shape[0]))) for r in vec_rows])
    return tuple(plan), packed_vecs, tuple(weights)


def _pick_tile_m(M):
    # Guarantee >= 2 "parallel" grid steps when possible so both v7x TensorCores
    # are used (and input DMA / output writeback overlaps compute). For large M,
    # pick the biggest standard tile that divides M.
    if M <= 1024 and M % 2 == 0 and (M // 2) % 8 == 0:
        return M // 2
    for cand in (512, 384, 256, 128, 64, 32, 16, 8):
        if M % cand == 0 and M // cand >= 2:
            return cand
    return M


@functools.partial(jax.jit, static_argnames=("plan", "tile_m", "out_dtype", "eps"))
def stacked_mlp_pallas(x, vecs, *weights, plan, tile_m=None,
                       out_dtype=jnp.float32, eps=1e-5):
    """Run the whole StackedMlp as a single pallas_call.

    x:       (M, in_dim) float32 activations
    vecs:    (n_vec, max_width) f32 packed biases / LN params (from prepare_*)
    weights: weight arrays in compute dtype (from prepare_*)
    plan:    static structure (from prepare_*)
    """
    M, in_dim = x.shape

    if tile_m is None:
        tile_m = _pick_tile_m(M)
    assert M % tile_m == 0, "row count must be divisible by tile_m"

    # Track final width + rough cost estimate (matmuls dominate).
    out_dim = in_dim
    flops = 0
    n_ln = 0
    wi = 0
    for lin_layers, ln in plan:
        for od, _ in lin_layers:
            flops += 2 * M * int(weights[wi].shape[0]) * od
            wi += 1
            out_dim = od
        if ln is not None:
            n_ln += 1
            out_dim = ln[2]
    bytes_accessed = (x.size * x.dtype.itemsize
                      + vecs.size * vecs.dtype.itemsize
                      + sum(w.size * w.dtype.itemsize for w in weights)
                      + M * out_dim * jnp.dtype(out_dtype).itemsize)

    # Constant (grid-invariant) specs: Mosaic only DMAs these once across the grid.
    const2d = lambda shape: pl.BlockSpec(shape, lambda i: (0, 0))

    in_specs = [pl.BlockSpec((tile_m, in_dim), lambda i: (i, 0)),   # activations
                const2d(vecs.shape)]                                # packed vec params
    in_specs += [const2d(w.shape) for w in weights]                 # weights

    kernel = _make_fused_kernel(plan, eps)

    return pl.pallas_call(
        kernel,
        out_shape=jax.ShapeDtypeStruct((M, out_dim), out_dtype),
        grid_spec=pltpu.PrefetchScalarGridSpec(
            num_scalar_prefetch=0,
            grid=(M // tile_m,),
            in_specs=in_specs,
            out_specs=pl.BlockSpec((tile_m, out_dim), lambda i: (i, 0)),
        ),
        compiler_params=pltpu.CompilerParams(
            dimension_semantics=("parallel",),
        ),
        cost_estimate=pl.CostEstimate(
            flops=int(flops),
            transcendentals=int(n_ln * M),
            bytes_accessed=int(bytes_accessed),
        ),
    )(x, vecs, *weights)


def init_stacked_mlp_params(key, widthss, norms):
    """Deterministic init matching the PyTorch module's parameter shapes.

    Linear: weight (out, in) stored transposed as (in, out); uniform(-1/sqrt(in), 1/sqrt(in)).
    LayerNorm(384): gamma, beta of shape (384,).
    NOTE: StackedMlp builds only len(widthss) - 1 MLPs (the last widths list is unused).
    """
    params = []
    for i in range(len(widthss) - 1):
        widths = widthss[i]
        ws, bs = [], []
        for l in range(len(widths) - 1):
            fan_in, fan_out = widths[l], widths[l + 1]
            key, kw, kb = jax.random.split(key, 3)
            bound = 1.0 / jnp.sqrt(fan_in)
            w_t = jax.random.uniform(kw, (fan_in, fan_out), jnp.float32, -bound, bound)
            b = jax.random.uniform(kb, (fan_out,), jnp.float32, -bound, bound)
            ws.append(w_t)
            bs.append(b)
        if norms[i]:
            key, kg, kbt = jax.random.split(key, 3)
            gamma = 1.0 + 0.1 * jax.random.normal(kg, (384,), jnp.float32)
            beta = 0.1 * jax.random.normal(kbt, (384,), jnp.float32)
            ln = (gamma, beta)
        else:
            ln = None
        params.append((ws, bs, ln))
    return params


def stacked_mlp_reference(x, params, *, compute_dtype=jnp.float32, eps=1e-5):
    """Pure-JAX reference using the same quantization points as the kernel."""
    h = x.astype(jnp.float32)
    use_f32 = jnp.dtype(compute_dtype) == jnp.float32
    for ws, bs, ln in params:
        for w, b in zip(ws, bs):
            if use_f32:
                h = jnp.dot(h, w, precision=jax.lax.Precision.HIGHEST) + b.reshape(1, -1)
            else:
                h = jnp.dot(h.astype(compute_dtype), w.astype(compute_dtype),
                            preferred_element_type=jnp.float32) + b.reshape(1, -1)
        if ln is not None:
            gamma, beta = ln
            mean = jnp.mean(h, axis=-1, keepdims=True)
            var = jnp.mean((h - mean) ** 2, axis=-1, keepdims=True)
            h = (h - mean) * jax.lax.rsqrt(var + eps) * gamma.reshape(1, -1) + beta.reshape(1, -1)
    return h


if __name__ == "__main__":
    # Config consistent with the module: feature dim must be 384 where LayerNorm(384)
    # applies; batch shrunk from 950 -> 256 for the test.
    widthss = [[384, 256, 384], [384, 128, 384], [384]]  # last list unused by StackedMlp
    norms = [True, False]

    key = jax.random.PRNGKey(0)
    key, kx = jax.random.split(key)
    M = 256
    x = jax.random.normal(kx, (M, 384), jnp.float32)

    raw_params = init_stacked_mlp_params(key, widthss, norms)

    # 1) Default path: bf16 weights / bf16 MXU operands, f32 accumulation & LayerNorm,
    #    params pre-converted once, tile_m=128 -> grid=(2,) "parallel" (both v7x TCs).
    plan_bf16, vecs_bf16, weights_bf16 = prepare_stacked_mlp_params(
        raw_params, compute_dtype=jnp.bfloat16)
    out_bf16 = jax.block_until_ready(
        stacked_mlp_pallas(x, vecs_bf16, *weights_bf16, plan=plan_bf16))
    ref_bf16 = stacked_mlp_reference(x, raw_params, compute_dtype=jnp.bfloat16)
    assert out_bf16.shape == ref_bf16.shape == (M, 384)
    err_bf16 = float(jnp.max(jnp.abs(out_bf16 - ref_bf16)))
    assert jnp.allclose(out_bf16, ref_bf16, atol=1e-2, rtol=1e-2), err_bf16

    # 2) f32 path -- tight correctness check against a HIGHEST-precision reference.
    plan_f32, vecs_f32, weights_f32 = prepare_stacked_mlp_params(
        raw_params, compute_dtype=jnp.float32)
    out_f32 = jax.block_until_ready(
        stacked_mlp_pallas(x, vecs_f32, *weights_f32, plan=plan_f32))
    ref_f32 = stacked_mlp_reference(x, raw_params, compute_dtype=jnp.float32)
    assert out_f32.shape == ref_f32.shape == (M, 384)
    err_f32 = float(jnp.max(jnp.abs(out_f32 - ref_f32)))
    assert jnp.allclose(out_f32, ref_f32, atol=1e-3, rtol=1e-3), err_f32

    print("KERNEL_OK")
</pallas_src>

<mosaic_0001>
module attributes {stable_mosaic.version = 11 : i64} {
  func.func @kernel(%arg0: i32, %arg1: memref<128x384xf32, #tpu.memory_space<vmem>>, %arg2: memref<6x384xf32, #tpu.memory_space<vmem>>, %arg3: memref<384x256xbf16, #tpu.memory_space<vmem>>, %arg4: memref<256x384xbf16, #tpu.memory_space<vmem>>, %arg5: memref<384x128xbf16, #tpu.memory_space<vmem>>, %arg6: memref<128x384xbf16, #tpu.memory_space<vmem>>, %arg7: memref<128x384xf32, #tpu.memory_space<vmem>>) attributes {dimension_semantics = [#tpu.dimension_semantics<parallel>], iteration_bounds = array<i64: 2>, scalar_prefetch = 0 : i64, scratch_operands = 0 : i64, tpu.core_type = #tpu.core_type<tc>, window_params = [{transform_indices = @transform_0, window_bounds = array<i64: 128, 384>}, {pipeline_mode = #tpu.pipeline_mode<synchronous>, transform_indices = @transform_1, window_bounds = array<i64: 6, 384>}, {pipeline_mode = #tpu.pipeline_mode<synchronous>, transform_indices = @transform_2, window_bounds = array<i64: 384, 256>}, {pipeline_mode = #tpu.pipeline_mode<synchronous>, transform_indices = @transform_3, window_bounds = array<i64: 256, 384>}, {pipeline_mode = #tpu.pipeline_mode<synchronous>, transform_indices = @transform_4, window_bounds = array<i64: 384, 128>}, {pipeline_mode = #tpu.pipeline_mode<synchronous>, transform_indices = @transform_5, window_bounds = array<i64: 128, 384>}, {transform_indices = @transform_6, window_bounds = array<i64: 128, 384>}]} {
    %c0 = arith.constant 0 : index
    %c0_0 = arith.constant 0 : index
    %0 = vector.load %arg1[%c0, %c0_0] : memref<128x384xf32, #tpu.memory_space<vmem>>, vector<128x384xf32>
    %c0_1 = arith.constant 0 : index
    %c0_2 = arith.constant 0 : index
    %1 = vector.load %arg3[%c0_1, %c0_2] : memref<384x256xbf16, #tpu.memory_space<vmem>>, vector<384x256xbf16>
    %c0_3 = arith.constant 0 : index
    %c0_4 = arith.constant 0 : index
    %2 = vector.load %arg2[%c0_3, %c0_4] : memref<6x384xf32, #tpu.memory_space<vmem>>, vector<1x256xf32>
    %3 = arith.truncf %0 : vector<128x384xf32> to vector<128x384xbf16>
    %cst = arith.constant dense<0.000000e+00> : vector<128x256xf32>
    %4 = tpu.matmul %3, %1, %cst {dimension_numbers = #tpu.dot_dimension_numbers<[1], [0], [0], [1], [0, 0, 1, 1], [], []>} : vector<128x384xbf16>, vector<384x256xbf16>, vector<128x256xf32> -> vector<128x256xf32>
    %5 = vector.broadcast %2 : vector<1x256xf32> to vector<128x256xf32>
    %6 = arith.addf %4, %5 : vector<128x256xf32>
    %c0_5 = arith.constant 0 : index
    %c0_6 = arith.constant 0 : index
    %7 = vector.load %arg4[%c0_5, %c0_6] : memref<256x384xbf16, #tpu.memory_space<vmem>>, vector<256x384xbf16>
    %c1 = arith.constant 1 : index
    %c0_7 = arith.constant 0 : index
    %8 = vector.load %arg2[%c1, %c0_7] : memref<6x384xf32, #tpu.memory_space<vmem>>, vector<1x384xf32>
    %9 = arith.truncf %6 : vector<128x256xf32> to vector<128x256xbf16>
    %cst_8 = arith.constant dense<0.000000e+00> : vector<128x384xf32>
    %10 = tpu.matmul %9, %7, %cst_8 {dimension_numbers = #tpu.dot_dimension_numbers<[1], [0], [0], [1], [0, 0, 1, 1], [], []>} : vector<128x256xbf16>, vector<256x384xbf16>, vector<128x384xf32> -> vector<128x384xf32>
    %11 = vector.broadcast %8 : vector<1x384xf32> to vector<128x384xf32>
    %12 = arith.addf %10, %11 : vector<128x384xf32>
    %c2 = arith.constant 2 : index
    %c0_9 = arith.constant 0 : index
    %13 = vector.load %arg2[%c2, %c0_9] : memref<6x384xf32, #tpu.memory_space<vmem>>, vector<1x384xf32>
    %c3 = arith.constant 3 : index
    %c0_10 = arith.constant 0 : index
    %14 = vector.load %arg2[%c3, %c0_10] : memref<6x384xf32, #tpu.memory_space<vmem>>, vector<1x384xf32>
    %cst_11 = arith.constant dense<0.000000e+00> : vector<128xf32>
    %15 = vector.multi_reduction <add>, %12, %cst_11 [1] : vector<128x384xf32> to vector<128xf32>
    %16 = vector.shape_cast %15 : vector<128xf32> to vector<128x1xf32>
    %cst_12 = arith.constant 3.840000e+02 : f32
    %17 = vector.broadcast %cst_12 : f32 to vector<128x1xf32>
    %18 = arith.divf %16, %17 : vector<128x1xf32>
    %19 = vector.broadcast %18 : vector<128x1xf32> to vector<128x384xf32>
    %20 = arith.subf %12, %19 : vector<128x384xf32>
    %21 = arith.mulf %20, %20 : vector<128x384xf32>
    %cst_13 = arith.constant dense<0.000000e+00> : vector<128xf32>
    %22 = vector.multi_reduction <add>, %21, %cst_13 [1] : vector<128x384xf32> to vector<128xf32>
    %23 = vector.shape_cast %22 : vector<128xf32> to vector<128x1xf32>
    %cst_14 = arith.constant 3.840000e+02 : f32
    %24 = vector.broadcast %cst_14 : f32 to vector<128x1xf32>
    %25 = arith.divf %23, %24 : vector<128x1xf32>
    %cst_15 = arith.constant 9.99999974E-6 : f32
    %26 = vector.broadcast %cst_15 : f32 to vector<128x1xf32>
    %27 = arith.addf %25, %26 : vector<128x1xf32>
    %28 = math.rsqrt %27 : vector<128x1xf32>
    %29 = vector.broadcast %28 : vector<128x1xf32> to vector<128x384xf32>
    %30 = arith.mulf %20, %29 : vector<128x384xf32>
    %31 = vector.broadcast %13 : vector<1x384xf32> to vector<128x384xf32>
    %32 = arith.mulf %30, %31 : vector<128x384xf32>
    %33 = vector.broadcast %14 : vector<1x384xf32> to vector<128x384xf32>
    %34 = arith.addf %32, %33 : vector<128x384xf32>
    %c0_16 = arith.constant 0 : index
    %c0_17 = arith.constant 0 : index
    %35 = vector.load %arg5[%c0_16, %c0_17] : memref<384x128xbf16, #tpu.memory_space<vmem>>, vector<384x128xbf16>
    %c4 = arith.constant 4 : index
    %c0_18 = arith.constant 0 : index
    %36 = vector.load %arg2[%c4, %c0_18] : memref<6x384xf32, #tpu.memory_space<vmem>>, vector<1x128xf32>
    %37 = arith.truncf %34 : vector<128x384xf32> to vector<128x384xbf16>
    %cst_19 = arith.constant dense<0.000000e+00> : vector<128x128xf32>
    %38 = tpu.matmul %37, %35, %cst_19 {dimension_numbers = #tpu.dot_dimension_numbers<[1], [0], [0], [1], [0, 0, 1, 1], [], []>} : vector<128x384xbf16>, vector<384x128xbf16>, vector<128x128xf32> -> vector<128x128xf32>
    %39 = vector.broadcast %36 : vector<1x128xf32> to vector<128x128xf32>
    %40 = arith.addf %38, %39 : vector<128x128xf32>
    %c0_20 = arith.constant 0 : index
    %c0_21 = arith.constant 0 : index
    %41 = vector.load %arg6[%c0_20, %c0_21] : memref<128x384xbf16, #tpu.memory_space<vmem>>, vector<128x384xbf16>
    %c5 = arith.constant 5 : index
    %c0_22 = arith.constant 0 : index
    %42 = vector.load %arg2[%c5, %c0_22] : memref<6x384xf32, #tpu.memory_space<vmem>>, vector<1x384xf32>
    %43 = arith.truncf %40 : vector<128x128xf32> to vector<128x128xbf16>
    %cst_23 = arith.constant dense<0.000000e+00> : vector<128x384xf32>
    %44 = tpu.matmul %43, %41, %cst_23 {dimension_numbers = #tpu.dot_dimension_numbers<[1], [0], [0], [1], [0, 0, 1, 1], [], []>} : vector<128x128xbf16>, vector<128x384xbf16>, vector<128x384xf32> -> vector<128x384xf32>
    %45 = vector.broadcast %42 : vector<1x384xf32> to vector<128x384xf32>
    %46 = arith.addf %44, %45 : vector<128x384xf32>
    %c0_24 = arith.constant 0 : index
    %c0_25 = arith.constant 0 : index
    %47 = vector.load %arg7[%c0_24, %c0_25] : memref<128x384xf32, #tpu.memory_space<vmem>>, vector<128x384xf32>
    tpu.vector_store %arg7[%c0_24, %c0_25], %46 {strides = array<i32>} : memref<128x384xf32, #tpu.memory_space<vmem>>, vector<128x384xf32>,
    return
  }
  func.func @transform_0(%arg0: i32) -> (i32, i32) {
    %c0_i32 = arith.constant 0 : i32
    %c0_i32_0 = arith.constant 0 : i32
    return %arg0, %c0_i32 : i32, i32
  }
  func.func @transform_1(%arg0: i32) -> (i32, i32) {
    %c0_i32 = arith.constant 0 : i32
    %c0_i32_0 = arith.constant 0 : i32
    %c0_i32_1 = arith.constant 0 : i32
    return %c0_i32, %c0_i32_0 : i32, i32
  }
  func.func @transform_2(%arg0: i32) -> (i32, i32) {
    %c0_i32 = arith.constant 0 : i32
    %c0_i32_0 = arith.constant 0 : i32
    %c0_i32_1 = arith.constant 0 : i32
    return %c0_i32, %c0_i32_0 : i32, i32
  }
  func.func @transform_3(%arg0: i32) -> (i32, i32) {
    %c0_i32 = arith.constant 0 : i32
    %c0_i32_0 = arith.constant 0 : i32
    %c0_i32_1 = arith.constant 0 : i32
    return %c0_i32, %c0_i32_0 : i32, i32
  }
  func.func @transform_4(%arg0: i32) -> (i32, i32) {
    %c0_i32 = arith.constant 0 : i32
    %c0_i32_0 = arith.constant 0 : i32
    %c0_i32_1 = arith.constant 0 : i32
    return %c0_i32, %c0_i32_0 : i32, i32
  }
  func.func @transform_5(%arg0: i32) -> (i32, i32) {
    %c0_i32 = arith.constant 0 : i32
    %c0_i32_0 = arith.constant 0 : i32
    %c0_i32_1 = arith.constant 0 : i32
    return %c0_i32, %c0_i32_0 : i32, i32
  }
  func.func @transform_6(%arg0: i32) -> (i32, i32) {
    %c0_i32 = arith.constant 0 : i32
    %c0_i32_0 = arith.constant 0 : i32
    return %arg0, %c0_i32 : i32, i32
  }
}

</mosaic_0001>

<bundles_post_ra>
// kernel: stacked_mlp_pallas.1
= control target key start
LH: loop header
LB: loop body
LE: loop exit
PB: predicated region body
PF: predicated region fallthrough
CT: control target
= control target key end

     0   :  { %11 = vsyncpa [#allocation3], 0  ;;  %s5310_s0 = inlined_call_operand.hbm [shape: f32[256,384], index: 0, kind: input, shape index: {}]   ;;  %s5311_s1 = inlined_call_operand.hbm [shape: f32[6,384], index: 1, kind: input, shape index: {}]   ;;  %s5312_s2 = inlined_call_operand.hbm [shape: bf16[384,256], index: 2, kind: input, shape index: {}]   ;;  %s5313_s3 = inlined_call_operand.hbm [shape: bf16[256,384], index: 3, kind: input, shape index: {}]   ;;  %s5314_s4 = inlined_call_operand.hbm [shape: bf16[384,128], index: 4, kind: input, shape index: {}]   ;;  %s5315_s5 = inlined_call_operand.hbm [shape: bf16[128,384], index: 5, kind: input, shape index: {}]   ;;  %s5316_s6 = inlined_call_operand.hbm [shape: f32[256,384], index: 6, kind: output, shape index: {}]  }
   0x1   :  { %13 = vsyncpa [#allocation3 + $0x1], 0 }
   0x2   :  { %14 = vsyncpa [#allocation6], 0 }
   0x3   :  { %15 = vsyncpa [#allocation9], 0 }
   0x4   :  { %16 = vsyncpa [#allocation12], 0 }
   0x5   :  { %17 = vsyncpa [#allocation4], 0 }
   0x6   :  { %19 = vsyncpa [#allocation4 + $0x1], 0  ;;  %s4060_s21 = smov 0   ;;  %s4062_s22 = smov 0  }
   0x7   :  { %s4064_s23 = smov 0   ;;  %s4066_s24 = smov 0  }
   0x8 LB: > { %s4007_s25 = smov [#allocation5]   ;;  %s4081_s27 = sadd.s32 4294967295, %s4005_s24   ;;  %s4005_s24 = sphi %s4066_s24, %s5377_s24   ;;  %s4001_s23 = sphi %s4064_s23, %s5376_s23   ;;  %s3997_s22 = sphi %s4062_s22, %s5375_s22   ;;  %s3993_s21 = sphi %s4060_s21, %s5374_s21  }
   0x9   : > { %s200_s26 = sshll.u32 %s4007_s25, 4  ;;  %p2968_p0 = scmp.ge.s32.totalorder %s4005_s24, 1  ;;  %s201_s26 = int_to_ptr.vmem [resolvable:$true] %s200_s26 }
   0xa   : > { %p5317_p1 = scmp.eq.s32.totalorder %s4081_s27, 0  ;;  %p187_p2 = scmp.lt.s32.totalorder %s4005_s24, 3 }
   0xb   : > { %s4008_s29 = smov [#allocation8]   ;;  %s4009_s8 = smov [#allocation7]  }
   0xc   : > { %p4086_p3 = pnand %p2968_p0, %p187_p2  ;;  %s223_s30 = sshll.u32 %s4008_s29, 4  ;;  %s4093_s30 = int_to_ptr.vmem [resolvable:$true] %s223_s30 }
   0xd   : > { %s210_s9 = sshll.u32 %s4009_s8, 4  ;;  %s3757_s12 = scalar_lea.hbm %s5311_s1, 384  ;;  %s4101_s9 = int_to_ptr.vmem [resolvable:$true] %s210_s9 }
   0xe   : > { %s5334_s28 = scalar_select %p4086_p3, 1, 0 }
   0xf   : > { %p3449_p5 = pneg %p4086_p3  ;;  %p3758_p7 = scmp.ne.s32.totalorder %s5311_s1, %s3757_s12 }
  0x10   : > { %p3764_p11 = scmp.lt.u32.totalorder %s3757_s12, %s5311_s1 }
  0x11   : > { %p4097_p6 = pnand %p3449_p5, %p5317_p1 }
  0x13   : > { %p4111_p8 = pneg %p4097_p6 }
  0x15   : > { %p3760_p9 = pnand %p4111_p8, %p3758_p7 }
  0x17   : > { %p3761_p10 = pneg %p3760_p9 }
  0x19   : > { %p3766_p12 = pnand %p3764_p11, %p3761_p10 }
  0x1b   : > { %3769 = shalt.err (!%p3766_p12)
}
  0x1c   : > { %s3770_s18 = scalar_lea.vmem %s201_s26, 384  ;;  %p3778_p5 = scmp.lt.s32.totalorder %s201_s26, %s201_s26 }
  0x1d   : > { %p3771_p13 = scmp.ne.s32.totalorder %s201_s26, %s3770_s18  ;;  %p3779_p4 = scmp.lt.s32.totalorder %s3770_s18, %s3770_s18 }
  0x1f   : > { %p3773_p0 = pnand %p3771_p13, %p4111_p8  ;;  %p3780_p1 = por %p3779_p4, %p3778_p5 }
  0x21   : > { %p3774_p2 = pneg %p3773_p0 }
  0x23   : > { %p3781_p3 = pnand %p3780_p1, %p3774_p2 }
  0x25   : > { %3784 = shalt.err (!%p3781_p3)
}
  0x26   : > { %3452 = dma.hbm_to_vmem [thread:$0]  (!%p4097_p6), %s5311_s1, 384, %s201_s26, [#allocation6]  }
  0x27   : > { %s3785_s8 = scalar_lea.hbm %s5313_s3, 6144 }
  0x28   : > { %p3786_p7 = scmp.ne.s32.totalorder %s5313_s3, %s3785_s8  ;;  %p3792_p1 = scmp.lt.u32.totalorder %s3785_s8, %s5313_s3 }
  0x2a   : > { %p3788_p9 = pnand %p3786_p7, %p4111_p8 }
  0x2c   : > { %p3789_p4 = pneg %p3788_p9 }
  0x2e   : > { %p3794_p3 = pnand %p3792_p1, %p3789_p4 }
  0x30   : > { %3797 = shalt.err (!%p3794_p3)
}
  0x31   : > { %s3798_s26 = scalar_lea.vmem %s4093_s30, 6144  ;;  %p3806_p13 = scmp.lt.s32.totalorder %s4093_s30, %s4093_s30 }
  0x32   : > { %p3799_p10 = scmp.ne.s32.totalorder %s4093_s30, %s3798_s26  ;;  %p3807_p0 = scmp.lt.s32.totalorder %s3798_s26, %s3798_s26 }
  0x34   : > { %p3801_p11 = pnand %p3799_p10, %p4111_p8  ;;  %p3808_p2 = por %p3807_p0, %p3806_p13 }
  0x36   : > { %p3802_p12 = pneg %p3801_p11 }
  0x38   : > { %p3809_p5 = pnand %p3808_p2, %p3802_p12 }
  0x3a   : > { %3812 = shalt.err (!%p3809_p5)
}
  0x3b   : > { %s4010_s14 = smov 192   ;;  %s4011_s16 = smov 12  }
  0x3c   : > { %3458 = dma.hbm_to_vmem [thread:$0]  (!%p4097_p6), %s5313_s3, 6144, %s4093_s30, [#allocation9], %s4010_s14, %s4010_s14, %s4011_s16  }
  0x3d   : > { %s3813_s25 = scalar_lea.hbm %s5312_s2, 6144 }
  0x3e   : > { %p3814_p7 = scmp.ne.s32.totalorder %s5312_s2, %s3813_s25  ;;  %p3820_p1 = scmp.lt.u32.totalorder %s3813_s25, %s5312_s2 }
  0x40   : > { %p3816_p9 = pnand %p3814_p7, %p4111_p8 }
  0x42   : > { %p3817_p4 = pneg %p3816_p9 }
  0x44   : > { %p3822_p3 = pnand %p3820_p1, %p3817_p4 }
  0x46   : > { %3825 = shalt.err (!%p3822_p3)
}
  0x47   : > { %s3826_s30 = scalar_lea.vmem %s4101_s9, 6144  ;;  %p3834_p13 = scmp.lt.s32.totalorder %s4101_s9, %s4101_s9 }
  0x48   : > { %p3827_p10 = scmp.ne.s32.totalorder %s4101_s9, %s3826_s30  ;;  %p3835_p0 = scmp.lt.s32.totalorder %s3826_s30, %s3826_s30 }
  0x4a   : > { %p3829_p11 = pnand %p3827_p10, %p4111_p8  ;;  %p3836_p2 = por %p3835_p0, %p3834_p13 }
  0x4c   : > { %p3830_p12 = pneg %p3829_p11 }
  0x4e   : > { %p3837_p5 = pnand %p3836_p2, %p3830_p12 }
  0x50   : > { %3840 = shalt.err (!%p3837_p5)
}
  0x51   : > { %s4012_s12 = smov 128   ;;  %s4013_s13 = smov 8  }
  0x52   : > { %3455 = dma.hbm_to_vmem [thread:$0]  (!%p4097_p6), %s5312_s2, 6144, %s4101_s9, [#allocation6], %s4012_s12, %s4012_s12, %s4013_s13  }
  0x53   : > { %s4014_s18 = smov [#allocation10]   ;;  %s3841_s29 = scalar_lea.hbm %s5314_s4, 3072 }
  0x54   : > { %s236_s19 = sshll.u32 %s4014_s18, 4  ;;  %p3842_p7 = scmp.ne.s32.totalorder %s5314_s4, %s3841_s29  ;;  %s237_s19 = int_to_ptr.vmem [resolvable:$true] %s236_s19 }
  0x55   : > { %p3848_p1 = scmp.lt.u32.totalorder %s3841_s29, %s5314_s4 }
  0x56   : > { %p3844_p9 = pnand %p3842_p7, %p4111_p8 }
  0x58   : > { %p3845_p4 = pneg %p3844_p9 }
  0x5a   : > { %p3850_p3 = pnand %p3848_p1, %p3845_p4 }
  0x5c   : > { %3853 = shalt.err (!%p3850_p3)
}
  0x5d   : > { %s3854_s9 = scalar_lea.vmem %s237_s19, 3072  ;;  %p3862_p13 = scmp.lt.s32.totalorder %s237_s19, %s237_s19 }
  0x5e   : > { %p3855_p10 = scmp.ne.s32.totalorder %s237_s19, %s3854_s9  ;;  %p3863_p0 = scmp.lt.s32.totalorder %s3854_s9, %s3854_s9 }
  0x60   : > { %p3857_p11 = pnand %p3855_p10, %p4111_p8  ;;  %p3864_p2 = por %p3863_p0, %p3862_p13 }
  0x62   : > { %p3858_p12 = pneg %p3857_p11 }
  0x64   : > { %p3865_p5 = pnand %p3864_p2, %p3858_p12 }
  0x66   : > { %3868 = shalt.err (!%p3865_p5)
}
  0x67   : > { %s4015_s12 = smov 64   ;;  %s4016_s13 = smov 4  }
  0x68   : > { %3461 = dma.hbm_to_vmem [thread:$0]  (!%p4097_p6), %s5314_s4, 3072, %s237_s19, [#allocation9], %s4015_s12, %s4015_s12, %s4016_s13  }
  0x69   : > { %s4017_s18 = smov [#allocation11]   ;;  %s3869_s8 = scalar_lea.hbm %s5315_s5, 3072 }
  0x6a   : > { %s249_s20 = sshll.u32 %s4017_s18, 4  ;;  %p3870_p7 = scmp.ne.s32.totalorder %s5315_s5, %s3869_s8  ;;  %s250_s20 = int_to_ptr.vmem [resolvable:$true] %s249_s20 }
  0x6b   : > { %p3876_p1 = scmp.lt.u32.totalorder %s3869_s8, %s5315_s5 }
  0x6c   : > { %p3872_p9 = pnand %p3870_p7, %p4111_p8 }
  0x6e   : > { %p3873_p4 = pneg %p3872_p9 }
  0x70   : > { %p3878_p3 = pnand %p3876_p1, %p3873_p4 }
  0x72   : > { %3881 = shalt.err (!%p3878_p3)
}
  0x73   : > { %s3882_s19 = scalar_lea.vmem %s250_s20, 3072  ;;  %p3890_p13 = scmp.lt.s32.totalorder %s250_s20, %s250_s20 }
  0x74   : > { %p3883_p10 = scmp.ne.s32.totalorder %s250_s20, %s3882_s19  ;;  %p3891_p0 = scmp.lt.s32.totalorder %s3882_s19, %s3882_s19 }
  0x76   : > { %p3885_p11 = pnand %p3883_p10, %p4111_p8  ;;  %p3892_p2 = por %p3891_p0, %p3890_p13 }
  0x78   : > { %p3886_p12 = pneg %p3885_p11 }
  0x7a   : > { %p3893_p5 = pnand %p3892_p2, %p3886_p12 }
  0x7c   : > { %3896 = shalt.err (!%p3893_p5)
}
  0x7d   : > { %3464 = dma.hbm_to_vmem [thread:$0]  (!%p4097_p6), %s5315_s5, 3072, %s250_s20, [#allocation12], %s4010_s14, %s4010_s14, %s4011_s16  }
  0x7e   : > { %s2967_s7 = sadd.s32 4294967294, %s4005_s24   ;;  %s4217_s15 = sadd.s32 1, %s4005_s24  }
  0x7f   : > { %s32_s26 = sadd.s32 1, %s4001_s23  ;;  %s29_s17 = ssub.s32 %s4005_s24, %s4217_s15 }
  0x80   : > { %p39_p8 = scmp.ne.s32.totalorder %s4001_s23, %s3997_s22  ;;  %p30_p7 = scmp.eq.s32.totalorder %s29_s17, 0 }
  0x81   : > { %p40_p9 = scmp.eq.s32.totalorder %s4005_s24, 0  ;;  %p45_p4 = scmp.ne.s32.totalorder %s3997_s22, %s3993_s21 }
  0x82   : > { %p174_p1 = scmp.eq.s32.totalorder %s4081_s27, 1  ;;  %p5337_p10 = scmp.eq.s32.totalorder %s4081_s27, 0 }
  0x83   : > { %s4229_s18 = scalar_select %p30_p7, %s4001_s23, %s32_s26  }
  0x84   : > { %p41_p3 = por %p40_p9, %p39_p8  ;;  %p4233_p11 = por %p5337_p10, %p45_p4 }
  0x85   : > { %p4237_p6 = por %p174_p1, %p39_p8  ;;  %p180_p12 = scmp.eq.s32.totalorder %s2967_s7, 1 }
  0x86   : > { %p3478_p13 = scmp.lt.s32.totalorder %s4005_s24, 2  ;;  %s263_s16 = sand.u32 1, %s4001_s23  }
  0x87   : > { %s5339_s14 = scalar_select %p4237_p6, 1, 0 }
  0x88   : > { %p4243_p0 = por %p180_p12, %p45_p4  ;;  %s3421_s29 = smul.u32 384, %s263_s16 }
  0x89   : > { %p4247_p2 = pnand %p3478_p13, %p41_p3  ;;  %s3422_s10 = smul.u32 6144, %s4005_s24 }
  0x8a   : > { %s5340_s20 = scalar_select %p4243_p0, 1, 0 }
  0x8b   : > { %s4255_s9 = scalar_lea.hbm %s5310_s0, %s3422_s10  ;;  %s267_s19 = scalar_lea.vmem [#allocation2], %s3421_s29 }
  0x8c   : > { %s275_s12 = sshll.u32 %s267_s19, 4  ;;  %s4259_s13 = scalar_lea.sflag [#allocation3], %s263_s16  ;;  %s4257_s12 = int_to_ptr.vmem [resolvable:$true] %s275_s12 }
  0x8d   : > { %s3897_s7 = scalar_lea.hbm %s4255_s9, 6144  ;;  %p3899_p8 = pneg %p4247_p2 }
  0x8e   : > { %p3898_p5 = scmp.ne.s32.totalorder %s4255_s9, %s3897_s7  ;;  %s3902_s10 = scalar_lea.hbm %s5310_s0, 12288 }
  0x8f   : > { %p3903_p4 = scmp.lt.u32.totalorder %s4255_s9, %s5310_s0  ;;  %p3904_p1 = scmp.lt.u32.totalorder %s3902_s10, %s3897_s7 }
  0x90   : > { %p3900_p7 = pnand %p3899_p8, %p3898_p5  ;;  %p3906_p10 = scmp.lt.u32.totalorder %s3897_s7, %s4255_s9 }
  0x91   : > { %p3905_p3 = por %p3904_p1, %p3903_p4 }
  0x92   : > { %p3901_p9 = pneg %p3900_p7 }
  0x93   : > { %p3907_p12 = por %p3906_p10, %p3905_p3 }
  0x95   : > { %p3908_p13 = pnand %p3907_p12, %p3901_p9 }
  0x97   : > { %3911 = shalt.err (!%p3908_p13)
}
  0x98   : > { %s3912_s16 = scalar_lea.vmem %s4257_s12, 6144  ;;  %s4018_s29 = smov [#allocation2]  }
  0x99   : > { %p3913_p5 = scmp.ne.s32.totalorder %s4257_s12, %s3912_s16  ;;  %s3917_s19 = sshll.u32 %s4018_s29, 4  ;;  %s3918_s19 = int_to_ptr.vmem [resolvable:$false] %s3917_s19 }
  0x9a   : > { %s3919_s26 = scalar_lea.vmem %s3918_s19, 12288  ;;  %p3920_p6 = scmp.lt.s32.totalorder %s4257_s12, %s3918_s19 }
  0x9b   : > { %p3915_p7 = pnand %p3913_p5, %p3899_p8  ;;  %p3921_p4 = scmp.lt.s32.totalorder %s3919_s26, %s3912_s16 }
  0x9d   : > { %p3916_p0 = pneg %p3915_p7  ;;  %p3922_p1 = por %p3921_p4, %p3920_p6 }
  0x9f   : > { %p3923_p3 = pnand %p3922_p1, %p3916_p0 }
  0xa1   : > { %3926 = shalt.err (!%p3923_p3)
}
  0xa2   : > { %s4019_s7 = smov 384   ;;  %s4020_s17 = smov 24  }
  0xa3   : > { %3468 = dma.hbm_to_vmem [thread:$0]  (!%p4247_p2), %s4255_s9, 6144, %s4257_s12, %s4259_s13, %s4019_s7, %s4019_s7, %s4020_s17  }
  0xa4   : > { %p5342_p8 = scmp.ne.s32.totalorder %s5334_s28, 0 }
  0xa6   : > { %287 = sbr.rel (%p5342_p8) target bundleno = 1657 (0x679), region = 44 }
  0xad   : > { %s4290_s10 = sand.u32 1, %s3997_s22  }
  0xae   : > { %s3423_s11 = smul.u32 384, %s4290_s10  ;;  %s290_s30 = scalar_lea.sflag [#allocation3], %s4290_s10 }
  0xb0   : > { %s4296_s16 = scalar_lea.vmem [#allocation2], %s3423_s11 }
  0xb1   : > { %3972 = dma.done.wait (%p4233_p11), %s290_s30, 6144  }
  0xb2   : > { %3974 = vsyncadd (%p4233_p11), %s290_s30, 4294961152  ;;  %p5343_p6 = scmp.eq.s32.totalorder %s4081_s27, 0 }
  0xb4   : > { %3976 = dma.done.wait (%p5343_p6), [#allocation6], 6528   ;;  %p5344_p0 = pmov %p5343_p6 }
  0xb6   : > { %3978 = vsyncadd (%p5344_p0), [#allocation6], 4294960768  ;;  %p5345_p2 = pmov %p5344_p0 }
  0xb7   : > { %p5346_p9 = pmov %p5344_p0 }
  0xb8   : > { %3980 = dma.done.wait (%p5345_p2), [#allocation9], 9216  }
  0xb9   : > { %3982 = vsyncadd (%p5346_p9), [#allocation9], 4294958080  ;;  %p5347_p10 = pmov %p5344_p0 }
  0xba   : > { %p5348_p12 = pmov %p5344_p0 }
  0xbb   : > { %3984 = dma.done.wait (%p5347_p10), [#allocation12], 3072  }
  0xbc   : > { %3986 = vsyncadd (%p5348_p12), [#allocation12], 4294964224  ;;  %v3533_v0 = vld [vmem:[#allocation7 + $0x4] ss:$8 sps:$4 sm:$0xff]   ;;  %v3535_v1 = vld [vmem:[#allocation7] ss:$8 sps:$4 sm:$0xff]  }
  0xbd   : > { %717 = vmatprep.subr.bf16.mxu0 %v3533_v0  ;;  %v3536_v2 = vld [vmem:[#allocation7 + $0x14] ss:$8 sps:$4 sm:$0xff]   ;;  %v3538_v3 = vld [vmem:[#allocation7 + $0x10] ss:$8 sps:$4 sm:$0xff]   ;;  %v3539_v4 = vld [vmem:[#allocation7 + $0x24] ss:$8 sps:$4 sm:$0xff]  }
  0xbe   : > { %718 = vmatpush1.bf16.msra.mxu0 %v3535_v1  ;;  %v3541_v5 = vld [vmem:[#allocation7 + $0x20] ss:$8 sps:$4 sm:$0xff]   ;;  %v3542_v6 = vld [vmem:[#allocation7 + $0x34] ss:$8 sps:$4 sm:$0xff]   ;;  %v3544_v7 = vld [vmem:[#allocation7 + $0x30] ss:$8 sps:$4 sm:$0xff]  }
  0xbf   : > { %719 = vmatprep.subr.bf16.mxu0 %v3536_v2  ;;  %v3545_v8 = vld [vmem:[#allocation7 + $0x44] ss:$8 sps:$4 sm:$0xff]   ;;  %v3547_v9 = vld [vmem:[#allocation7 + $0x40] ss:$8 sps:$4 sm:$0xff]   ;;  %v3548_v10 = vld [vmem:[#allocation7 + $0x54] ss:$8 sps:$4 sm:$0xff]  }
  0xc0   : > { %v3550_v11 = vld [vmem:[#allocation7 + $0x50] ss:$8 sps:$4 sm:$0xff]   ;;  %v3551_v12 = vld [vmem:[#allocation7 + $0x64] ss:$8 sps:$4 sm:$0xff]   ;;  %v3553_v16 = vld [vmem:[#allocation7 + $0x60] ss:$8 sps:$4 sm:$0xff]  }
  0xc1   : > { %v346_v13 = vld [vmem:[%s4296_s16 + $0x8] sm:$0xff]  ;;  %v349_v14 = vld [vmem:[%s4296_s16 + $0x20] sm:$0xff]  ;;  %v348_v39 = vld [vmem:[%s4296_s16 + $0x18] sm:$0xff]  ;;  %s5163_s28 = scalar_lea.vmem [#allocation13], %s3423_s11  ;;  %s3424_s25 = smul.u32 6144, %s4081_s27 }
  0xc2   : > { %720 = vmatpush1.bf16.msra.mxu0 %v3538_v3  ;;  %v443_v15 = vpack.c.bf16 %v349_v14, %v346_v13  ;;  %v3554_v17 = vld [vmem:[#allocation7 + $0x74] ss:$8 sps:$4 sm:$0xff]   ;;  %v3556_v18 = vld [vmem:[#allocation7 + $0x70] ss:$8 sps:$4 sm:$0xff]   ;;  %v3557_v19 = vld [vmem:[#allocation7 + $0x84] ss:$8 sps:$4 sm:$0xff]  }
  0xc3   : > { %721 = vmatprep.subr.bf16.mxu0 %v3539_v4  ;;  %v3559_v20 = vld [vmem:[#allocation7 + $0x80] ss:$8 sps:$4 sm:$0xff]   ;;  %v3560_v21 = vld [vmem:[#allocation7 + $0x94] ss:$8 sps:$4 sm:$0xff]   ;;  %v3562_v22 = vld [vmem:[#allocation7 + $0x90] ss:$8 sps:$4 sm:$0xff]   ;;  %s5260_s12 = scalar_lea.hbm %s5316_s6, %s3424_s25 }
  0xc4   : > { %749 = vmatprep.mubr.bf16.mxu0 %v443_v15  ;;  %v3563_v23 = vld [vmem:[#allocation7 + $0xa4] ss:$8 sps:$4 sm:$0xff]   ;;  %v3565_v24 = vld [vmem:[#allocation7 + $0xa0] ss:$8 sps:$4 sm:$0xff]   ;;  %v3566_v25 = vld [vmem:[#allocation7 + $0xb4] ss:$8 sps:$4 sm:$0xff]  }
  0xc5   : > { %v3568_v26 = vld [vmem:[#allocation7 + $0xb0] ss:$8 sps:$4 sm:$0xff]   ;;  %v3569_v27 = vld [vmem:[#allocation7 + $0xc4] ss:$8 sps:$4 sm:$0xff]   ;;  %v3571_v28 = vld [vmem:[#allocation7 + $0xc0] ss:$8 sps:$4 sm:$0xff]  }
  0xc6   : > { %722 = vmatpush1.bf16.msra.mxu0 %v3541_v5  ;;  %v3572_v29 = vld [vmem:[#allocation7 + $0xd4] ss:$8 sps:$4 sm:$0xff]   ;;  %v3574_v30 = vld [vmem:[#allocation7 + $0xd0] ss:$8 sps:$4 sm:$0xff]   ;;  %v3575_v31 = vld [vmem:[#allocation7 + $0xe4] ss:$8 sps:$4 sm:$0xff]  }
  0xc7   : > { %723 = vmatprep.subr.bf16.mxu0 %v3542_v6  ;;  %v3577_v32 = vld [vmem:[#allocation7 + $0xe0] ss:$8 sps:$4 sm:$0xff]   ;;  %v3578_v33 = vld [vmem:[#allocation7 + $0xf4] ss:$8 sps:$4 sm:$0xff]   ;;  %v3605_v34 = vld [vmem:[#allocation8 + $0x4] ss:$12 sps:$4 sm:$0xff]  }
  0xc8   : > { %v3607_v35 = vld [vmem:[#allocation8] ss:$12 sps:$4 sm:$0xff]   ;;  %v3608_v36 = vld [vmem:[#allocation8 + $0x1c] ss:$12 sps:$4 sm:$0xff]   ;;  %v3580_v37 = vld [vmem:[#allocation7 + $0xf0] ss:$8 sps:$4 sm:$0xff]   ;;  %1297 = vmatprep.subr.bf16.mxu1 %v3605_v34 }
  0xc9   : > { %v345_v38 = vld [vmem:[%s4296_s16] sm:$0xff]  ;;  %v352_v41 = vld [vmem:[%s4296_s16 + $0x38] sm:$0xff]  ;;  %v355_v42 = vld [vmem:[%s4296_s16 + $0x50] sm:$0xff]  ;;  %1298 = vmatpush1.bf16.msra.mxu1 %v3607_v35  ;;  %s2846_s8 = sshll.u32 %s5163_s28, 4  ;;  %s2832_s13 = scalar_lea.sflag [#allocation4], %s4290_s10  ;;  %s5264_s8 = int_to_ptr.vmem [resolvable:$true] %s2846_s8 }
  0xca   : > { %724 = vmatpush1.bf16.msra.mxu0 %v3544_v7  ;;  %v3583_v40 = vld [vmem:[#allocation7 + $0x104] ss:$8 sps:$4 sm:$0xff]   ;;  %v442_v44 = vpack.c.bf16 %v348_v39, %v345_v38  ;;  %1299 = vmatprep.subr.bf16.mxu1 %v3608_v36  ;;  %v3611_v45 = vld [vmem:[#allocation8 + $0x34] ss:$12 sps:$4 sm:$0xff]   ;;  %v446_v47 = vpack.c.bf16 %v355_v42, %v352_v41  ;;  %v351_v49 = vld [vmem:[%s4296_s16 + $0x30] sm:$0xff]  ;;  %s3927_s29 = scalar_lea.vmem %s5264_s8, 6144 }
  0xcb   : > { %725 = vmatprep.subr.bf16.mxu0 %v3545_v8  ;;  %v3610_v43 = vld [vmem:[#allocation8 + $0x18] ss:$12 sps:$4 sm:$0xff]   ;;  %v3581_v46 = vld [vmem:[#allocation7 + $0x100] ss:$8 sps:$4 sm:$0xff]   ;;  %v3586_v48 = vld [vmem:[#allocation7 + $0x114] ss:$8 sps:$4 sm:$0xff]   ;;  %p3928_p11 = scmp.ne.s32.totalorder %s5264_s8, %s3927_s29 }
  0xcc   : > { %v354_v50 = vld [vmem:[%s4296_s16 + $0x48] sm:$0xff]  ;;  %v3614_v54 = vld [vmem:[#allocation8 + $0x4c] ss:$12 sps:$4 sm:$0xff]   ;;  %v3587_v59 = vld [vmem:[#allocation7 + $0x120] ss:$8 sps:$4 sm:$0xff]   ;;  %p5371_p13 = scmp.ne.s32.totalorder %s5339_s14, 0 }
  0xcd   : > { %1300 = vmatpush1.bf16.msra.mxu1 %v3610_v43  ;;  %v3613_v51 = vld [vmem:[#allocation8 + $0x30] ss:$12 sps:$4 sm:$0xff]   ;;  %v361_v55 = vld [vmem:[%s4296_s16 + $0x80] sm:$0xff]  ;;  %v445_v60 = vpack.c.bf16 %v354_v50, %v351_v49  ;;  %v360_v2 = vld [vmem:[%s4296_s16 + $0x78] sm:$0xff]  ;;  %s4022_s19 = smov [#allocation13]  }
  0xce   : > { %726 = vmatpush1.bf16.msra.mxu0 %v3547_v9  ;;  %v3584_v52 = vld [vmem:[#allocation7 + $0x110] ss:$8 sps:$4 sm:$0xff]   ;;  %1301 = vmatprep.subr.bf16.mxu1 %v3611_v45  ;;  %v3589_v56 = vld [vmem:[#allocation7 + $0x124] ss:$8 sps:$4 sm:$0xff]   ;;  %v3616_v57 = vld [vmem:[#allocation8 + $0x48] ss:$12 sps:$4 sm:$0xff]   ;;  %p3929_p5 = pnand %p3928_p11, %p5371_p13 }
  0xcf   : > { %727 = vmatprep.subr.bf16.mxu0 %v3548_v10  ;;  %v358_v53 = vld [vmem:[%s4296_s16 + $0x68] sm:$0xff]  ;;  %v3619_v63 = vld [vmem:[#allocation8 + $0x60] ss:$12 sps:$4 sm:$0xff]   ;;  %v3620_v0 = vld [vmem:[#allocation8 + $0x7c] ss:$12 sps:$4 sm:$0xff]   ;;  %s3931_s26 = sshll.u32 %s4022_s19, 4  ;;  %s3932_s26 = int_to_ptr.vmem [resolvable:$false] %s3931_s26 }
  0xd0   : > { %v3617_v58 = vld [vmem:[#allocation8 + $0x64] ss:$12 sps:$4 sm:$0xff]   ;;  %v3592_v61 = vld [vmem:[#allocation7 + $0x134] ss:$8 sps:$4 sm:$0xff]   ;;  %v449_v62 = vpack.c.bf16 %v361_v55, %v358_v53  ;;  %v357_v1 = vld [vmem:[%s4296_s16 + $0x60] sm:$0xff]  ;;  %p3930_p7 = pneg %p3929_p5  ;;  %s3933_s7 = scalar_lea.vmem %s3932_s26, 12288 }
  0xd1   : > { %1302 = vmatpush1.bf16.msra.mxu1 %v3613_v51  ;;  %v3590_v3 = vld [vmem:[#allocation7 + $0x130] ss:$8 sps:$4 sm:$0xff]   ;;  %v364_v4 = vld [vmem:[%s4296_s16 + $0x98] sm:$0xff]  ;;  %v448_v10 = vpack.c.bf16 %v360_v2, %v357_v1  ;;  %v385_v43 = vld [vmem:[%s4296_s16 + $0x140] sm:$0xff]  ;;  %p3934_p4 = scmp.lt.s32.totalorder %s5264_s8, %s3932_s26  ;;  %p3935_p1 = scmp.lt.s32.totalorder %s3933_s7, %s3927_s29 }
  0xd2   : > { %728 = vmatpush1.bf16.msra.mxu0 %v3550_v11  ;;  %1303 = vmatprep.subr.bf16.mxu1 %v3614_v54  ;;  %v367_v5 = vld [vmem:[%s4296_s16 + $0xb0] sm:$0xff]  ;;  %v3595_v6 = vld [vmem:[#allocation7 + $0x144] ss:$8 sps:$4 sm:$0xff]   ;;  %v3623_v8 = vld [vmem:[#allocation8 + $0x94] ss:$12 sps:$4 sm:$0xff]  }
  0xd3   : > { %729 = vmatprep.subr.bf16.mxu0 %v3551_v12  ;;  %v3622_v7 = vld [vmem:[#allocation8 + $0x78] ss:$12 sps:$4 sm:$0xff]   ;;  %v3593_v9 = vld [vmem:[#allocation7 + $0x140] ss:$8 sps:$4 sm:$0xff]   ;;  %v3598_v11 = vld [vmem:[#allocation7 + $0x154] ss:$8 sps:$4 sm:$0xff]   ;;  %v452_v12 = vpack.c.bf16 %v367_v5, %v364_v4  ;;  %p3936_p3 = por %p3935_p1, %p3934_p4 }
  0xd4   : > { %v3625_v13 = vld [vmem:[#allocation8 + $0x90] ss:$12 sps:$4 sm:$0xff]   ;;  %v3626_v14 = vld [vmem:[#allocation8 + $0xac] ss:$12 sps:$4 sm:$0xff]   ;;  %v3635_v35 = vld [vmem:[#allocation8 + $0xf4] ss:$12 sps:$4 sm:$0xff]  }
  0xd5   : > { %1304 = vmatpush1.bf16.msra.mxu1 %v3616_v57  ;;  %v363_v15 = vld [vmem:[%s4296_s16 + $0x90] sm:$0xff]  ;;  %v378_v41 = vld [vmem:[%s4296_s16 + $0x108] sm:$0xff]  ;;  %v381_v50 = vld [vmem:[%s4296_s16 + $0x120] sm:$0xff]  ;;  %p3937_p8 = pnand %p3936_p3, %p3930_p7 }
  0xd6   : > { %730 = vmatpush1.bf16.msra.mxu0 %v3553_v16  ;;  %1305 = vmatprep.subr.bf16.mxu1 %v3617_v58  ;;  %v366_v16 = vld [vmem:[%s4296_s16 + $0xa8] sm:$0xff]  ;;  %v3634_v34 = vld [vmem:[#allocation8 + $0xd8] ss:$12 sps:$4 sm:$0xff]   ;;  %v3644_v49 = vld [vmem:[#allocation8 + $0x13c] ss:$12 sps:$4 sm:$0xff]  }
  0xd7   : > { %731 = vmatprep.subr.bf16.mxu0 %v3554_v17  ;;  %v3596_v17 = vld [vmem:[#allocation7 + $0x150] ss:$8 sps:$4 sm:$0xff]   ;;  %v384_v51 = vld [vmem:[%s4296_s16 + $0x138] sm:$0xff] }
  0xd8   : > { %v3637_v38 = vld [vmem:[#allocation8 + $0xf0] ss:$12 sps:$4 sm:$0xff]   ;;  %v3638_v39 = vld [vmem:[#allocation8 + $0x10c] ss:$12 sps:$4 sm:$0xff]   ;;  %v460_v55 = vpack.c.bf16 %v384_v51, %v381_v50  ;;  %v356_v1 = vld [vmem:[%s4296_s16 + $0x58] sm:$0xff] }
  0xd9   : > { %1306 = vmatpush1.bf16.msra.mxu1 %v3619_v63  ;;  %v382_v42 = vld [vmem:[%s4296_s16 + $0x128] sm:$0xff]  ;;  %v391_v53 = vld [vmem:[%s4296_s16 + $0x170] sm:$0xff] }
  0xda   : > { %732 = vmatpush1.bf16.msra.mxu0 %v3556_v18  ;;  %1307 = vmatprep.subr.bf16.mxu1 %v3620_v0  ;;  %v370_v18 = vld [vmem:[%s4296_s16 + $0xc8] sm:$0xff]  ;;  %v3646_v54 = vld [vmem:[#allocation8 + $0x138] ss:$12 sps:$4 sm:$0xff]   ;;  %v353_v0 = vld [vmem:[%s4296_s16 + $0x40] sm:$0xff] }
  0xdb   : > { %733 = vmatprep.subr.bf16.mxu0 %v3557_v19  ;;  %v373_v19 = vld [vmem:[%s4296_s16 + $0xe0] sm:$0xff]  ;;  %v3641_v45 = vld [vmem:[#allocation8 + $0x124] ss:$12 sps:$4 sm:$0xff]   ;;  %v387_v57 = vld [vmem:[%s4296_s16 + $0x150] sm:$0xff]  ;;  %v447_v2 = vpack.c.bf16 %v356_v1, %v353_v0 }
  0xdc   : > { %v390_v58 = vld [vmem:[%s4296_s16 + $0x168] sm:$0xff] }
  0xdd   : > { %1308 = vmatpush1.bf16.msra.mxu1 %v3622_v7  ;;  %v362_v4 = vld [vmem:[%s4296_s16 + $0x88] sm:$0xff]  ;;  %v368_v7 = vld [vmem:[%s4296_s16 + $0xb8] sm:$0xff] }
  0xde   : > { %734 = vmatpush1.bf16.msra.mxu0 %v3559_v20  ;;  %v3601_v20 = vld [vmem:[#allocation7 + $0x164] ss:$8 sps:$4 sm:$0xff]   ;;  %1309 = vmatprep.subr.bf16.mxu1 %v3623_v8 }
  0xdf   : > { %735 = vmatprep.subr.bf16.mxu0 %v3560_v21  ;;  %v3628_v21 = vld [vmem:[#allocation8 + $0xa8] ss:$12 sps:$4 sm:$0xff]  }
  0xe1   : > { %1310 = vmatpush1.bf16.msra.mxu1 %v3625_v13  ;;  %v380_v13 = vld [vmem:[%s4296_s16 + $0x118] sm:$0xff] }
  0xe2   : > { %736 = vmatpush1.bf16.msra.mxu0 %v3562_v22  ;;  %v3629_v22 = vld [vmem:[#allocation8 + $0xc4] ss:$12 sps:$4 sm:$0xff]   ;;  %1311 = vmatprep.subr.bf16.mxu1 %v3626_v14 }
  0xe3   : > { %737 = vmatprep.subr.bf16.mxu0 %v3563_v23  ;;  %v3599_v23 = vld [vmem:[#allocation7 + $0x160] ss:$8 sps:$4 sm:$0xff]  }
  0xe5   : > { %1312 = vmatpush1.bf16.msra.mxu1 %v3628_v21  ;;  %v3647_v21 = vld [vmem:[#allocation8 + $0x154] ss:$12 sps:$4 sm:$0xff]  }
  0xe6   : > { %738 = vmatpush1.bf16.msra.mxu0 %v3565_v24  ;;  %v451_v24 = vpack.c.bf16 %v366_v16, %v363_v15  ;;  %1313 = vmatprep.subr.bf16.mxu1 %v3629_v22  ;;  %v383_v15 = vld [vmem:[%s4296_s16 + $0x130] sm:$0xff]  ;;  %v386_v16 = vld [vmem:[%s4296_s16 + $0x148] sm:$0xff] }
  0xe7   : > { %739 = vmatprep.subr.bf16.mxu0 %v3566_v25  ;;  %v3604_v25 = vld [vmem:[#allocation7 + $0x174] ss:$8 sps:$4 sm:$0xff]  }
  0xe8   : > { %v3649_v22 = vld [vmem:[#allocation8 + $0x150] ss:$12 sps:$4 sm:$0xff]  }
  0xea   : > { %740 = vmatpush1.bf16.msra.mxu0 %v3568_v26  ;;  %v455_v26 = vpack.c.bf16 %v373_v19, %v370_v18  ;;  %v389_v18 = vld [vmem:[%s4296_s16 + $0x160] sm:$0xff]  ;;  %v392_v19 = vld [vmem:[%s4296_s16 + $0x178] sm:$0xff] }
  0xeb   : > { %741 = vmatprep.subr.bf16.mxu0 %v3569_v27  ;;  %v3631_v27 = vld [vmem:[#allocation8 + $0xc0] ss:$12 sps:$4 sm:$0xff]  }
  0xec   : > { %1314 = vmatpush1.bf16.msra.mxu1 %v3631_v27 }
  0xee   : > { %742 = vmatpush1.bf16.msra.mxu0 %v3571_v28  ;;  %v3632_v28 = vld [vmem:[#allocation8 + $0xdc] ss:$12 sps:$4 sm:$0xff]  }
  0xef   : > { %743 = vmatprep.subr.bf16.mxu0 %v3572_v29  ;;  %v369_v29 = vld [vmem:[%s4296_s16 + $0xc0] sm:$0xff]  ;;  %1315 = vmatprep.subr.bf16.mxu1 %v3632_v28 }
  0xf0   : > { %1316 = vmatpush1.bf16.msra.mxu1 %v3634_v34 }
  0xf1   : > { %1317 = vmatprep.subr.bf16.mxu1 %v3635_v35 }
  0xf2   : > { %744 = vmatpush1.bf16.msra.mxu0 %v3574_v30  ;;  %v372_v30 = vld [vmem:[%s4296_s16 + $0xd8] sm:$0xff] }
  0xf3   : > { %745 = vmatprep.subr.bf16.mxu0 %v3575_v31  ;;  %v3602_v31 = vld [vmem:[#allocation7 + $0x170] ss:$8 sps:$4 sm:$0xff]   ;;  %v454_v36 = vpack.c.bf16 %v372_v30, %v369_v29 }
  0xf4   : > { %1318 = vmatpush1.bf16.msra.mxu1 %v3637_v38  ;;  %v441_v29 = vld [vmem:[#allocation5] ss:$8 sm:$0x3] }
  0xf5   : > { %1319 = vmatprep.subr.bf16.mxu1 %v3638_v39 }
  0xf6   : > { %746 = vmatpush1.bf16.msra.mxu0 %v3577_v32  ;;  %v376_v32 = vld [vmem:[%s4296_s16 + $0xf8] sm:$0xff] }
  0xf7   : > { %747 = vmatprep.subr.bf16.mxu0 %v3578_v33  ;;  %v379_v33 = vld [vmem:[%s4296_s16 + $0x110] sm:$0xff] }
  0xfa   : > { %748 = vmatpush1.bf16.msra.mxu0 %v3580_v37  ;;  %v458_v37 = vpack.c.bf16 %v379_v33, %v376_v32 }
  0xfb   : > { %830 = vmatprep.subr.bf16.mxu0 %v3583_v40  ;;  %v375_v40 = vld [vmem:[%s4296_s16 + $0xf0] sm:$0xff] }
  0xfd   : > { %750 = vmatmul.mubr.bf16.vlgmr.msra.gmra.mrb[0].mxu0 %v442_v44  ;;  %v3640_v44 = vld [vmem:[#allocation8 + $0x108] ss:$12 sps:$4 sm:$0xff]  }
  0xfe   : > { %831 = vmatpush1.bf16.msra.mxu0 %v3581_v46  ;;  %759 = vmatprep.mubr.bf16.mxu0 %v446_v47  ;;  %v457_v46 = vpack.c.bf16 %v378_v41, %v375_v40  ;;  %v461_v47 = vpack.c.bf16 %v385_v43, %v382_v42  ;;  %v3654_v43 = vld [vmem:[#allocation8 + $0x8] ss:$12 sps:$4 sm:$0xff]  }
  0xff   : > { %832 = vmatprep.subr.bf16.mxu0 %v3586_v48  ;;  %v3643_v48 = vld [vmem:[#allocation8 + $0x120] ss:$12 sps:$4 sm:$0xff]   ;;  %1320 = vmatpush1.bf16.msra.mxu1 %v3640_v44 }
 0x100   : > { %1321 = vmatprep.subr.bf16.mxu1 %v3641_v45  ;;  %v3655_v44 = vld [vmem:[#allocation8 + $0xe0] ss:$12 sps:$4 sm:$0xff]  }
 0x102   : > { %833 = vmatpush1.bf16.msra.mxu0 %v3584_v52  ;;  %v388_v52 = vld [vmem:[%s4296_s16 + $0x158] sm:$0xff] }
 0x103   : > { %834 = vmatprep.subr.bf16.mxu0 %v3589_v56  ;;  %1322 = vmatpush1.bf16.msra.mxu1 %v3643_v48  ;;  %v464_v56 = vpack.c.bf16 %v391_v53, %v388_v52  ;;  %v3656_v48 = vld [vmem:[#allocation8 + $0x20] ss:$12 sps:$4 sm:$0xff]   ;;  %v3657_v52 = vld [vmem:[#allocation8 + $0xf8] ss:$12 sps:$4 sm:$0xff]  }
 0x104   : > { %1323 = vmatprep.subr.bf16.mxu1 %v3644_v49 }
 0x105   : > { %760 = vmatmul.mubr.bf16.gmra.mrb[4].mxu0 %v445_v60  ;;  %v5320_v60 = vmov 0  }
 0x106   : > { %769 = vmatprep.mubr.bf16.mxu0 %v449_v62  ;;  %835 = vmatpush1.bf16.msra.mxu0 %v3587_v59  ;;  %v463_v59 = vpack.c.bf16 %v390_v58, %v387_v57  ;;  %v350_v62 = vld [vmem:[%s4296_s16 + $0x28] sm:$0xff]  ;;  %v3658_v57 = vld [vmem:[#allocation8 + $0x38] ss:$12 sps:$4 sm:$0xff]  }
 0x107   : > { %836 = vmatprep.subr.bf16.mxu0 %v3592_v61  ;;  %1324 = vmatpush1.bf16.msra.mxu1 %v3646_v54  ;;  %v347_v61 = vld [vmem:[%s4296_s16 + $0x10] sm:$0xff] }
 0x108   : > { %v444_v63 = vpack.c.bf16 %v350_v62, %v347_v61  ;;  %1325 = vmatprep.subr.bf16.mxu1 %v3647_v21  ;;  %v3659_v58 = vld [vmem:[#allocation8 + $0x110] ss:$12 sps:$4 sm:$0xff]  }
 0x10a   : > { %837 = vmatpush1.bf16.msra.mxu0 %v3590_v3  ;;  %v359_v3 = vld [vmem:[%s4296_s16 + $0x70] sm:$0xff] }
 0x10b   : > { %838 = vmatprep.subr.bf16.mxu0 %v3595_v6  ;;  %v450_v5 = vpack.c.bf16 %v362_v4, %v359_v3  ;;  %v365_v6 = vld [vmem:[%s4296_s16 + $0xa0] sm:$0xff]  ;;  %1326 = vmatpush1.bf16.msra.mxu1 %v3649_v22  ;;  %v3666_v22 = vld [vmem:[#allocation8 + $0x98] ss:$12 sps:$4 sm:$0xff]  }
 0x10c   : > { %v453_v8 = vpack.c.bf16 %v368_v7, %v365_v6  ;;  %v3661_v3 = vld [vmem:[#allocation8 + $0x128] ss:$12 sps:$4 sm:$0xff]  }
 0x10d   : > { %770 = vmatmul.mubr.bf16.gmra.mrb[8].mxu0 %v448_v10  ;;  %v374_v10 = vld [vmem:[%s4296_s16 + $0xe8] sm:$0xff] }
 0x10e   : > { %779 = vmatprep.mubr.bf16.mxu0 %v452_v12  ;;  %839 = vmatpush1.bf16.msra.mxu0 %v3593_v9  ;;  %v371_v9 = vld [vmem:[%s4296_s16 + $0xd0] sm:$0xff]  ;;  %v377_v12 = vld [vmem:[%s4296_s16 + $0x100] sm:$0xff] }
 0x10f   : > { %840 = vmatprep.subr.bf16.mxu0 %v3598_v11  ;;  %v456_v11 = vpack.c.bf16 %v374_v10, %v371_v9  ;;  %v459_v14 = vpack.c.bf16 %v380_v13, %v377_v12  ;;  %v3663_v9 = vld [vmem:[#allocation8 + $0x140] ss:$12 sps:$4 sm:$0xff]  }
 0x110   : > { %v3664_v13 = vld [vmem:[#allocation8 + $0x80] ss:$12 sps:$4 sm:$0xff]  }
 0x112   : > { %841 = vmatpush1.bf16.msra.mxu0 %v3596_v17  ;;  %v462_v17 = vpack.c.bf16 %v386_v16, %v383_v15 }
 0x113   : > { %842 = vmatprep.subr.bf16.mxu0 %v3601_v20  ;;  %v465_v20 = vpack.c.bf16 %v392_v19, %v389_v18 }
 0x115   : > { %780 = vmatmul.mubr.bf16.gmra.mrb[12].mxu0 %v451_v24  ;;  %v3652_v24 = vld [vmem:[#allocation8 + $0x168] ss:$12 sps:$4 sm:$0xff]  }
 0x116   : > { %789 = vmatprep.mubr.bf16.mxu0 %v455_v26  ;;  %843 = vmatpush1.bf16.msra.mxu0 %v3599_v23  ;;  %v3650_v23 = vld [vmem:[#allocation8 + $0x16c] ss:$12 sps:$4 sm:$0xff]   ;;  %v467_v26 = vlaneseq }
 0x117   : > { %844 = vmatprep.subr.bf16.mxu0 %v3604_v25  ;;  %1327 = vmatprep.subr.bf16.mxu1 %v3650_v23  ;;  %v3653_v25 = vld [vmem:[#allocation8 + $0xc8] ss:$12 sps:$4 sm:$0xff]   ;;  %v3667_v23 = vld [vmem:[#allocation8 + $0x170] ss:$12 sps:$4 sm:$0xff]  }
 0x118   : > { %1328 = vmatpush1.bf16.msra.mxu1 %v3652_v24  ;;  %v4370_v27 = vshrl.u32 %v467_v26, 7 }
 0x119   : > { %3133 = vmatprep.subr.bf16.mxu1 %v3653_v25 }
 0x11a   : > { %845 = vmatpush1.bf16.msra.mxu0 %v3602_v31  ;;  %v4373_v28 = vsub.s32 0, %v4370_v27  ;;  %v4376_v30 = vsub.s32 1, %v4370_v27 }
 0x11c   : > { %5349 = vst [vmem:[#allocation19_spill] sm:$0xff] %v4373_v28  ;;  %5350 = vst [vmem:[#allocation20_spill] sm:$0xff] %v4376_v30  ;;  %v4379_v31 = vrot.slane %v441_v29, %v4373_v28  ;;  %v4382_v33 = vrot.slane %v441_v29, %v4376_v30  ;;  %v3668_v29 = vld [vmem:[#allocation8 + $0xb0] ss:$12 sps:$4 sm:$0xff]  }
 0x11d   : > { %790 = vmatmul.mubr.bf16.gmra.mrb[16].mxu0 %v454_v36 }
 0x11e   : > { %799 = vmatprep.mubr.bf16.mxu0 %v458_v37 }
 0x125   : > { %800 = vmatmul.mubr.bf16.gmra.mrb[20].mxu0 %v457_v46 }
 0x126   : > { %809 = vmatprep.mubr.bf16.mxu0 %v461_v47 }
 0x12d   : > { %810 = vmatmul.mubr.bf16.gmra.mrb[24].mxu0 %v460_v55 }
 0x12e   : > { %819 = vmatprep.mubr.bf16.mxu0 %v464_v56 }
 0x135   : > { %820 = vmatmul.mubr.bf16.gmra.mrb[28].mxu0 %v463_v59 }
 0x136   : > { %862 = vmatprep.mubr.bf16.mxu0 %v5320_v60 }
 0x13d   : > { %863 = vmatmul.mubr.bf16.vlgmr.msra.gmra.mrb[0].mxu0 %v444_v63  ;;  %v3660_v63 = vld [vmem:[#allocation8 + $0x50] ss:$12 sps:$4 sm:$0xff]  }
 0x13e   : > { %872 = vmatprep.mubr.bf16.mxu0 %v5320_v60 }
 0x145   : > { %873 = vmatmul.mubr.bf16.gmra.mrb[4].mxu0 %v447_v2 }
 0x146   : > { %882 = vmatprep.mubr.bf16.mxu0 %v5320_v60 }
 0x14d   : > { %883 = vmatmul.mubr.bf16.gmra.mrb[8].mxu0 %v450_v5 }
 0x14e   : > { %892 = vmatprep.mubr.bf16.mxu0 %v5320_v60 }
 0x155   : > { %893 = vmatmul.mubr.bf16.gmra.mrb[12].mxu0 %v453_v8  ;;  %v3662_v8 = vld [vmem:[#allocation8 + $0x68] ss:$12 sps:$4 sm:$0xff]  }
 0x156   : > { %902 = vmatprep.mubr.bf16.mxu0 %v5320_v60 }
 0x15d   : > { %903 = vmatmul.mubr.bf16.gmra.mrb[16].mxu0 %v456_v11 }
 0x15e   : > { %912 = vmatprep.mubr.bf16.mxu0 %v5320_v60 }
 0x165   : > { %913 = vmatmul.mubr.bf16.gmra.mrb[20].mxu0 %v459_v14 }
 0x166   : > { %922 = vmatprep.mubr.bf16.mxu0 %v5320_v60 }
 0x16d   : > { %923 = vmatmul.mubr.bf16.gmra.mrb[24].mxu0 %v462_v17  ;;  %v3665_v17 = vld [vmem:[#allocation8 + $0x158] ss:$12 sps:$4 sm:$0xff]  }
 0x16e   : > { %932 = vmatprep.mubr.bf16.mxu0 %v5320_v60 }
 0x175   : > { %933 = vmatmul.mubr.bf16.gmra.mrb[28].mxu0 %v465_v20 }
 0x210   : > { %v864_v32 = vpop.f32.mrb[0].mxu0 }
 0x211   : > { %v866_v34 = vpop.f32.mrb[1].mxu0  ;;  %v3357_v36 = vadd.f32 %v864_v32, %v4379_v31 }
 0x212   : > { %v868_v35 = vpop.f32.mrb[2].mxu0  ;;  %v3358_v39 = vadd.f32 %v866_v34, %v4382_v33 }
 0x213   : > { %v3359_v37 = vadd.f32 %v868_v35, %v4379_v31  ;;  %v870_v38 = vpop.f32.mrb[3].mxu0 }
 0x214   : > { %v3360_v40 = vadd.f32 %v870_v38, %v4382_v33 }
 0x215   : > { %v4388_v41 = vpack.c.bf16 %v3359_v37, %v3357_v36 }
 0x216   : > { %v4390_v42 = vpack.c.bf16 %v3360_v40, %v3358_v39 }
 0x218   : > { %v874_v45 = vpop.f32.mrb[4].mxu0  ;;  %1329 = vmatprep.mubr.bf16.mxu1 %v4390_v42 }
 0x219   : > { %v876_v46 = vpop.f32.mrb[5].mxu0  ;;  %1330 = vmatmul.mubr.bf16.vlgmr.msra.gmra.mrb[0].mxu1 %v4388_v41  ;;  %v3361_v49 = vadd.f32 %v874_v45, %v4379_v31 }
 0x21a   : > { %v878_v47 = vpop.f32.mrb[6].mxu0  ;;  %3134 = vmatpush3.bf16.msra.mxu1 %v3654_v43  ;;  %v3362_v53 = vadd.f32 %v876_v46, %v4382_v33 }
 0x21b   : > { %v3363_v50 = vadd.f32 %v878_v47, %v4379_v31  ;;  %v880_v51 = vpop.f32.mrb[7].mxu0  ;;  %3135 = vmatprep.subr.bf16.mxu1 %v3655_v44 }
 0x21c   : > { %v3364_v54 = vadd.f32 %v880_v51, %v4382_v33 }
 0x21d   : > { %v4398_v55 = vpack.c.bf16 %v3363_v50, %v3361_v49 }
 0x21e   : > { %v4400_v56 = vpack.c.bf16 %v3364_v54, %v3362_v53  ;;  %3136 = vmatpush3.bf16.msra.mxu1 %v3656_v48 }
 0x21f   : > { %3137 = vmatprep.subr.bf16.mxu1 %v3657_v52 }
 0x220   : > { %v884_v59 = vpop.f32.mrb[8].mxu0  ;;  %1339 = vmatprep.mubr.bf16.mxu1 %v4400_v56 }
 0x221   : > { %v886_v61 = vpop.f32.mrb[9].mxu0  ;;  %1340 = vmatmul.mubr.bf16.gmra.mrb[4].mxu1 %v4398_v55  ;;  %v3365_v0 = vadd.f32 %v884_v59, %v4379_v31 }
 0x222   : > { %v888_v62 = vpop.f32.mrb[10].mxu0  ;;  %3138 = vmatpush3.bf16.msra.mxu1 %v3658_v57  ;;  %v3366_v4 = vadd.f32 %v886_v61, %v4382_v33 }
 0x223   : > { %v3367_v1 = vadd.f32 %v888_v62, %v4379_v31  ;;  %v890_v2 = vpop.f32.mrb[11].mxu0  ;;  %3139 = vmatprep.subr.bf16.mxu1 %v3659_v58 }
 0x224   : > { %v3368_v5 = vadd.f32 %v890_v2, %v4382_v33 }
 0x225   : > { %v4408_v6 = vpack.c.bf16 %v3367_v1, %v3365_v0 }
 0x226   : > { %v4410_v7 = vpack.c.bf16 %v3368_v5, %v3366_v4  ;;  %3140 = vmatpush3.bf16.msra.mxu1 %v3660_v63 }
 0x227   : > { %3141 = vmatprep.subr.bf16.mxu1 %v3661_v3 }
 0x228   : > { %v894_v10 = vpop.f32.mrb[12].mxu0  ;;  %1349 = vmatprep.mubr.bf16.mxu1 %v4410_v7 }
 0x229   : > { %v896_v11 = vpop.f32.mrb[13].mxu0  ;;  %1350 = vmatmul.mubr.bf16.gmra.mrb[8].mxu1 %v4408_v6  ;;  %v3369_v14 = vadd.f32 %v894_v10, %v4379_v31 }
 0x22a   : > { %v898_v12 = vpop.f32.mrb[14].mxu0  ;;  %3142 = vmatpush3.bf16.msra.mxu1 %v3662_v8  ;;  %v3370_v18 = vadd.f32 %v896_v11, %v4382_v33 }
 0x22b   : > { %v3371_v15 = vadd.f32 %v898_v12, %v4379_v31  ;;  %v900_v16 = vpop.f32.mrb[15].mxu0  ;;  %3143 = vmatprep.subr.bf16.mxu1 %v3663_v9 }
 0x22c   : > { %v3372_v19 = vadd.f32 %v900_v16, %v4382_v33 }
 0x22d   : > { %v4418_v20 = vpack.c.bf16 %v3371_v15, %v3369_v14 }
 0x22e   : > { %v4420_v21 = vpack.c.bf16 %v3372_v19, %v3370_v18  ;;  %3144 = vmatpush3.bf16.msra.mxu1 %v3664_v13 }
 0x22f   : > { %3145 = vmatprep.subr.bf16.mxu1 %v3665_v17 }
 0x230   : > { %v904_v24 = vpop.f32.mrb[16].mxu0  ;;  %1359 = vmatprep.mubr.bf16.mxu1 %v4420_v21 }
 0x231   : > { %v906_v25 = vpop.f32.mrb[17].mxu0  ;;  %1360 = vmatmul.mubr.bf16.gmra.mrb[12].mxu1 %v4418_v20  ;;  %v3373_v32 = vadd.f32 %v904_v24, %v4379_v31 }
 0x232   : > { %v908_v26 = vpop.f32.mrb[18].mxu0  ;;  %3146 = vmatpush3.bf16.msra.mxu1 %v3666_v22  ;;  %v3374_v36 = vadd.f32 %v906_v25, %v4382_v33 }
 0x233   : > { %v3375_v34 = vadd.f32 %v908_v26, %v4379_v31  ;;  %v910_v35 = vpop.f32.mrb[19].mxu0  ;;  %3147 = vmatprep.subr.bf16.mxu1 %v3667_v23 }
 0x234   : > { %v3376_v37 = vadd.f32 %v910_v35, %v4382_v33 }
 0x235   : > { %v1017_v38 = vpack.c.bf16 %v3375_v34, %v3373_v32 }
 0x236   : > { %v1018_v39 = vpack.c.bf16 %v3376_v37, %v3374_v36  ;;  %3148 = vmatpush3.bf16.msra.mxu1 %v3668_v29 }
 0x238   : > { %v914_v40 = vpop.f32.mrb[20].mxu0  ;;  %1369 = vmatprep.mubr.bf16.mxu1 %v1018_v39 }
 0x239   : > { %v916_v43 = vpop.f32.mrb[21].mxu0  ;;  %1370 = vmatmul.mubr.bf16.gmra.mrb[16].mxu1 %v1017_v38  ;;  %v3377_v45 = vadd.f32 %v914_v40, %v4379_v31 }
 0x23a   : > { %v918_v44 = vpop.f32.mrb[22].mxu0  ;;  %v3378_v48 = vadd.f32 %v916_v43, %v4382_v33 }
 0x23b   : > { %v3379_v46 = vadd.f32 %v918_v44, %v4379_v31  ;;  %v920_v47 = vpop.f32.mrb[23].mxu0 }
 0x23c   : > { %v3380_v49 = vadd.f32 %v920_v47, %v4382_v33  ;;  %v4499_v47 = vsub.s32 2, %v4370_v27 }
 0x23d   : > { %v1019_v50 = vpack.c.bf16 %v3379_v46, %v3377_v45 }
 0x23e   : > { %v1020_v51 = vpack.c.bf16 %v3380_v49, %v3378_v48  ;;  %5351 = vst [vmem:[#allocation21_spill] sm:$0xff] %v4499_v47 }
 0x240   : > { %v924_v52 = vpop.f32.mrb[24].mxu0  ;;  %1379 = vmatprep.mubr.bf16.mxu1 %v1020_v51 }
 0x241   : > { %v926_v53 = vpop.f32.mrb[25].mxu0  ;;  %1380 = vmatmul.mubr.bf16.gmra.mrb[20].mxu1 %v1019_v50  ;;  %v3381_v57 = vadd.f32 %v924_v52, %v4379_v31 }
 0x242   : > { %v928_v54 = vpop.f32.mrb[26].mxu0  ;;  %v3382_v61 = vadd.f32 %v926_v53, %v4382_v33 }
 0x243   : > { %v3383_v58 = vadd.f32 %v928_v54, %v4379_v31  ;;  %v930_v59 = vpop.f32.mrb[27].mxu0 }
 0x244   : > { %v3384_v62 = vadd.f32 %v930_v59, %v4382_v33 }
 0x245   : > { %v1021_v63 = vpack.c.bf16 %v3383_v58, %v3381_v57 }
 0x246   : > { %v1022_v0 = vpack.c.bf16 %v3384_v62, %v3382_v61 }
 0x248   : > { %v934_v1 = vpop.f32.mrb[28].mxu0  ;;  %1389 = vmatprep.mubr.bf16.mxu1 %v1022_v0 }
 0x249   : > { %v936_v2 = vpop.f32.mrb[29].mxu0  ;;  %1390 = vmatmul.mubr.bf16.gmra.mrb[24].mxu1 %v1021_v63  ;;  %v3385_v4 = vadd.f32 %v934_v1, %v4379_v31 }
 0x24a   : > { %v938_v3 = vpop.f32.mrb[30].mxu0  ;;  %v3386_v9 = vadd.f32 %v936_v2, %v4382_v33 }
 0x24b   : > { %v3387_v5 = vadd.f32 %v938_v3, %v4379_v31  ;;  %v940_v8 = vpop.f32.mrb[31].mxu0 }
 0x24c   : > { %v3388_v10 = vadd.f32 %v940_v8, %v4382_v33 }
 0x24d   : > { %v1023_v11 = vpack.c.bf16 %v3387_v5, %v3385_v4 }
 0x24e   : > { %v1024_v12 = vpack.c.bf16 %v3388_v10, %v3386_v9 }
 0x250   : > { %1399 = vmatprep.mubr.bf16.mxu1 %v1024_v12 }
 0x251   : > { %1400 = vmatmul.mubr.bf16.gmra.mrb[28].mxu1 %v1023_v11 }
 0x252   : > { %1442 = vmatprep.mubr.bf16.mxu1 %v4390_v42 }
 0x259   : > { %1443 = vmatmul.mubr.bf16.vlgmr.msra.gmra.mrb[32].mxu1 %v4388_v41 }
 0x25a   : > { %1450 = vmatprep.mubr.bf16.mxu1 %v4400_v56 }
 0x261   : > { %1451 = vmatmul.mubr.bf16.gmra.mrb[36].mxu1 %v4398_v55 }
 0x262   : > { %1458 = vmatprep.mubr.bf16.mxu1 %v4410_v7 }
 0x269   : > { %1459 = vmatmul.mubr.bf16.gmra.mrb[40].mxu1 %v4408_v6 }
 0x26a   : > { %1466 = vmatprep.mubr.bf16.mxu1 %v4420_v21 }
 0x271   : > { %1467 = vmatmul.mubr.bf16.gmra.mrb[44].mxu1 %v4418_v20 }
 0x272   : > { %1474 = vmatprep.mubr.bf16.mxu1 %v1018_v39  ;;  %v1008_v39 = vld [vmem:[#allocation5 + $0x1] ss:$8 sm:$0x7] }
 0x273   : > { %v4493_v45 = vrot.slane %v1008_v39, %v4373_v28  ;;  %v4496_v46 = vrot.slane %v1008_v39, %v4376_v30  ;;  %v3674_v28 = vld [vmem:[#allocation10 + $0x88] sm:$0xff]  }
 0x279   : > { %1475 = vmatmul.mubr.bf16.gmra.mrb[48].mxu1 %v1017_v38 }
 0x27a   : > { %1482 = vmatprep.mubr.bf16.mxu1 %v1020_v51  ;;  %v4508_v51 = vrot.slane %v1008_v39, %v4499_v47 }
 0x281   : > { %1483 = vmatmul.mubr.bf16.gmra.mrb[52].mxu1 %v1019_v50 }
 0x282   : > { %1490 = vmatprep.mubr.bf16.mxu1 %v1022_v0 }
 0x289   : > { %1491 = vmatmul.mubr.bf16.gmra.mrb[56].mxu1 %v1021_v63 }
 0x28a   : > { %1498 = vmatprep.mubr.bf16.mxu1 %v1024_v12 }
 0x291   : > { %1499 = vmatmul.mubr.bf16.gmra.mrb[60].mxu1 %v1023_v11 }
 0x2ec   : > { %v1331_v31 = vpop.f32.mrb[0].mxu1 }
 0x2ed   : > { %v1333_v33 = vpop.f32.mrb[1].mxu1  ;;  %v4502_v48 = vadd.f32 %v1331_v31, %v4493_v45 }
 0x2ee   : > { %v1335_v41 = vpop.f32.mrb[2].mxu1  ;;  %v4505_v49 = vadd.f32 %v1333_v33, %v4496_v46 }
 0x2ef   : > { %v1337_v42 = vpop.f32.mrb[3].mxu1  ;;  %v4511_v57 = vadd.f32 %v1335_v41, %v4493_v45 }
 0x2f0   : > { %v4514_v27 = vadd.f32 %v1337_v42, %v4496_v46  ;;  %v1511_v62 = vadd.f32 %v4505_v49, %v4502_v48 }
 0x2f2   : > { %v1515_v1 = vadd.f32 %v4514_v27, %v4511_v57 }
 0x2f4   : > { %v1341_v55 = vpop.f32.mrb[4].mxu1 }
 0x2f5   : > { %v1343_v56 = vpop.f32.mrb[5].mxu1  ;;  %v4528_v2 = vadd.f32 %v1341_v55, %v4493_v45 }
 0x2f6   : > { %v1345_v7 = vpop.f32.mrb[6].mxu1  ;;  %v4531_v3 = vadd.f32 %v1343_v56, %v4496_v46 }
 0x2f7   : > { %v1347_v6 = vpop.f32.mrb[7].mxu1  ;;  %v4535_v11 = vadd.f32 %v1345_v7, %v4493_v45 }
 0x2f8   : > { %v4538_v31 = vadd.f32 %v1347_v6, %v4496_v46  ;;  %v1519_v42 = vadd.f32 %v4531_v3, %v4528_v2 }
 0x2fa   : > { %v1523_v7 = vadd.f32 %v4538_v31, %v4535_v11 }
 0x2fc   : > { %v1351_v13 = vpop.f32.mrb[8].mxu1 }
 0x2fd   : > { %v1353_v14 = vpop.f32.mrb[9].mxu1  ;;  %v4552_v39 = vadd.f32 %v1351_v13, %v4493_v45 }
 0x2fe   : > { %v4448_v15 = vpop.f32.mrb[10].mxu1  ;;  %v4555_v6 = vadd.f32 %v1353_v14, %v4496_v46 }
 0x2ff   : > { %v4450_v16 = vpop.f32.mrb[11].mxu1 }
 0x300   : > { %v1527_v14 = vadd.f32 %v4555_v6, %v4552_v39 }
 0x304   : > { %v4452_v17 = vpop.f32.mrb[12].mxu1 }
 0x305   : > { %v4454_v18 = vpop.f32.mrb[13].mxu1 }
 0x306   : > { %v4456_v19 = vpop.f32.mrb[14].mxu1 }
 0x307   : > { %v4458_v20 = vpop.f32.mrb[15].mxu1 }
 0x30c   : > { %v4460_v21 = vpop.f32.mrb[16].mxu1 }
 0x30d   : > { %v4462_v22 = vpop.f32.mrb[17].mxu1 }
 0x30e   : > { %v4464_v23 = vpop.f32.mrb[18].mxu1 }
 0x30f   : > { %v4466_v24 = vpop.f32.mrb[19].mxu1 }
 0x314   : > { %v4468_v25 = vpop.f32.mrb[20].mxu1 }
 0x315   : > { %v4470_v26 = vpop.f32.mrb[21].mxu1 }
 0x316   : > { %v4472_v29 = vpop.f32.mrb[22].mxu1 }
 0x317   : > { %v4474_v32 = vpop.f32.mrb[23].mxu1 }
 0x31c   : > { %v4476_v34 = vpop.f32.mrb[24].mxu1 }
 0x31d   : > { %v4478_v35 = vpop.f32.mrb[25].mxu1 }
 0x31e   : > { %v4480_v36 = vpop.f32.mrb[26].mxu1 }
 0x31f   : > { %v4482_v37 = vpop.f32.mrb[27].mxu1 }
 0x324   : > { %v4484_v38 = vpop.f32.mrb[28].mxu1 }
 0x325   : > { %v4486_v40 = vpop.f32.mrb[29].mxu1 }
 0x326   : > { %v4488_v43 = vpop.f32.mrb[30].mxu1 }
 0x327   : > { %v4490_v44 = vpop.f32.mrb[31].mxu1 }
 0x32c   : > { %v3149_v50 = vpop.f32.mrb[32].mxu1 }
 0x32d   : > { %v3150_v52 = vpop.f32.mrb[33].mxu1 }
 0x32e   : > { %v3151_v53 = vadd.f32 %v3150_v52, %v3149_v50  ;;  %v3152_v54 = vpop.f32.mrb[34].mxu1 }
 0x32f   : > { %v3153_v58 = vpop.f32.mrb[35].mxu1 }
 0x330   : > { %v3154_v59 = vadd.f32 %v3153_v58, %v3152_v54  ;;  %v4517_v61 = vadd.f32 %v3151_v53, %v4508_v51  ;;  %v4559_v53 = vadd.f32 %v4448_v15, %v4493_v45  ;;  %v4563_v54 = vadd.f32 %v4450_v16, %v4496_v46 }
 0x332   : > { %v4522_v63 = vadd.f32 %v3154_v59, %v4508_v51  ;;  %v1512_v0 = vadd.f32 %v1511_v62, %v4517_v61  ;;  %v1531_v15 = vadd.f32 %v4563_v54, %v4559_v53 }
 0x334   : > { %v3155_v4 = vpop.f32.mrb[36].mxu1  ;;  %1513 = vadd.xlane.f32.xlu0 %v1512_v0  ;;  %v1516_v10 = vadd.f32 %v1515_v1, %v4522_v63 }
 0x335   : > { %v3156_v5 = vpop.f32.mrb[37].mxu1 }
 0x336   : > { %v3157_v8 = vadd.f32 %v3156_v5, %v3155_v4  ;;  %v3158_v9 = vpop.f32.mrb[38].mxu1  ;;  %v4579_v5 = vadd.f32 %v4452_v17, %v4493_v45 }
 0x337   : > { %v3159_v12 = vpop.f32.mrb[39].mxu1 }
 0x338   : > { %v3160_v33 = vadd.f32 %v3159_v12, %v3158_v9  ;;  %1517 = vadd.xlane.f32.xlu0 %v1516_v10  ;;  %v4541_v41 = vadd.f32 %v3157_v8, %v4508_v51  ;;  %v4583_v8 = vadd.f32 %v4454_v18, %v4496_v46 }
 0x33a   : > { %v4546_v55 = vadd.f32 %v3160_v33, %v4508_v51  ;;  %v1520_v56 = vadd.f32 %v1519_v42, %v4541_v41  ;;  %v4588_v33 = vadd.f32 %v4456_v19, %v4493_v45  ;;  %v4592_v42 = vadd.f32 %v4458_v20, %v4496_v46 }
 0x33b   : > { %v1535_v18 = vadd.f32 %v4583_v8, %v4579_v5 }
 0x33c   : > { %v3161_v50 = vpop.f32.mrb[40].mxu1  ;;  %1521 = vadd.xlane.f32.xlu1 %v1520_v56  ;;  %v1524_v62 = vadd.f32 %v1523_v7, %v4546_v55 }
 0x33d   : > { %v3162_v52 = vpop.f32.mrb[41].mxu1 }
 0x33e   : > { %v3163_v58 = vadd.f32 %v3162_v52, %v3161_v50  ;;  %v3164_v59 = vpop.f32.mrb[42].mxu1 }
 0x33f   : > { %v3165_v13 = vpop.f32.mrb[43].mxu1 }
 0x340   : > { %v4569_v0 = vadd.f32 %v3163_v58, %v4508_v51  ;;  %v3166_v1 = vadd.f32 %v3165_v13, %v3164_v59  ;;  %1525 = vadd.xlane.f32.xlu1 %v1524_v62  ;;  %v1539_v58 = vadd.f32 %v4592_v42, %v4588_v33  ;;  %v4607_v59 = vadd.f32 %v4460_v21, %v4493_v45 }
 0x341   : > { %v4611_v62 = vadd.f32 %v4462_v22, %v4496_v46 }
 0x342   : > { %v4574_v4 = vadd.f32 %v3166_v1, %v4508_v51  ;;  %v1528_v16 = vadd.f32 %v1527_v14, %v4569_v0 }
 0x343   : > { %v1543_v22 = vadd.f32 %v4611_v62, %v4607_v59 }
 0x344   : > { %v3167_v9 = vpop.f32.mrb[44].mxu1  ;;  %1529 = vadd.xlane.f32.xlu0 %v1528_v16  ;;  %v1532_v10 = vadd.f32 %v1531_v15, %v4574_v4  ;;  %v4616_v15 = vadd.f32 %v4464_v23, %v4493_v45  ;;  %v4620_v16 = vadd.f32 %v4466_v24, %v4496_v46 }
 0x345   : > { %v3168_v12 = vpop.f32.mrb[45].mxu1 }
 0x346   : > { %v3169_v56 = vadd.f32 %v3168_v12, %v3167_v9  ;;  %v3170_v17 = vpop.f32.mrb[46].mxu1  ;;  %1533 = vadd.xlane.f32.xlu1 %v1532_v10 }
 0x347   : > { %v3171_v7 = vpop.f32.mrb[47].mxu1 }
 0x348   : > { %v4597_v50 = vadd.f32 %v3169_v56, %v4508_v51  ;;  %v3172_v52 = vadd.f32 %v3171_v7, %v3170_v17  ;;  %v1547_v17 = vadd.f32 %v4620_v16, %v4616_v15  ;;  %v4635_v7 = vadd.f32 %v4468_v25, %v4493_v45 }
 0x34a   : > { %v4602_v19 = vadd.f32 %v3172_v52, %v4508_v51  ;;  %v1536_v20 = vadd.f32 %v1535_v18, %v4597_v50  ;;  %v4639_v18 = vadd.f32 %v4470_v26, %v4496_v46 }
 0x34c   : > { %v3173_v13 = vpop.f32.mrb[48].mxu1  ;;  %1537 = vadd.xlane.f32.xlu0 %v1536_v20  ;;  %v1540_v14 = vadd.f32 %v1539_v58, %v4602_v19  ;;  %v1551_v26 = vadd.f32 %v4639_v18, %v4635_v7 }
 0x34d   : > { %v3174_v1 = vpop.f32.mrb[49].mxu1 }
 0x34e   : > { %v3175_v9 = vadd.f32 %v3174_v1, %v3173_v13  ;;  %v3176_v21 = vpop.f32.mrb[50].mxu1  ;;  %1541 = vadd.xlane.f32.xlu1 %v1540_v14  ;;  %v4644_v13 = vadd.f32 %v4472_v29, %v4493_v45  ;;  %v4648_v14 = vadd.f32 %v4474_v32, %v4496_v46 }
 0x34f   : > { %v3177_v10 = vpop.f32.mrb[51].mxu1 }
 0x350   : > { %v4625_v12 = vadd.f32 %v3175_v9, %v4508_v51  ;;  %v3178_v56 = vadd.f32 %v3177_v10, %v3176_v21 }
 0x352   : > { %v4630_v23 = vadd.f32 %v3178_v56, %v4508_v51  ;;  %v1544_v24 = vadd.f32 %v1543_v22, %v4625_v12  ;;  %v1555_v22 = vadd.f32 %v4648_v14, %v4644_v13  ;;  %v4663_v56 = vadd.f32 %v4476_v34, %v4493_v45 }
 0x354   : > { %v3179_v52 = vpop.f32.mrb[52].mxu1  ;;  %1545 = vadd.xlane.f32.xlu0 %v1544_v24  ;;  %v1548_v58 = vadd.f32 %v1547_v17, %v4630_v23  ;;  %v4667_v17 = vadd.f32 %v4478_v35, %v4496_v46 }
 0x355   : > { %v3180_v20 = vpop.f32.mrb[53].mxu1 }
 0x356   : > { %v3181_v1 = vadd.f32 %v3180_v20, %v3179_v52  ;;  %v3182_v25 = vpop.f32.mrb[54].mxu1  ;;  %1549 = vadd.xlane.f32.xlu1 %v1548_v58  ;;  %v4672_v20 = vadd.f32 %v4480_v36, %v4493_v45  ;;  %v1559_v35 = vadd.f32 %v4667_v17, %v4663_v56 }
 0x357   : > { %v3183_v9 = vpop.f32.mrb[55].mxu1 }
 0x358   : > { %v4653_v21 = vadd.f32 %v3181_v1, %v4508_v51  ;;  %v3184_v10 = vadd.f32 %v3183_v9, %v3182_v25  ;;  %v4676_v1 = vadd.f32 %v4482_v37, %v4496_v46 }
 0x35a   : > { %v4658_v29 = vadd.f32 %v3184_v10, %v4508_v51  ;;  %v1552_v32 = vadd.f32 %v1551_v26, %v4653_v21 }
 0x35c   : > { %v3185_v24 = vpop.f32.mrb[56].mxu1  ;;  %1553 = vadd.xlane.f32.xlu0 %v1552_v32  ;;  %v1556_v52 = vadd.f32 %v1555_v22, %v4658_v29  ;;  %v1563_v22 = vadd.f32 %v4676_v1, %v4672_v20  ;;  %v4691_v32 = vadd.f32 %v4484_v38, %v4493_v45 }
 0x35d   : > { %v3186_v58 = vpop.f32.mrb[57].mxu1 }
 0x35e   : > { %v3187_v25 = vadd.f32 %v3186_v58, %v3185_v24  ;;  %v3188_v34 = vpop.f32.mrb[58].mxu1  ;;  %1557 = vadd.xlane.f32.xlu1 %v1556_v52  ;;  %v4695_v24 = vadd.f32 %v4486_v40, %v4496_v46 }
 0x35f   : > { %v3189_v9 = vpop.f32.mrb[59].mxu1 }
 0x360   : > { %v4681_v26 = vadd.f32 %v3187_v25, %v4508_v51  ;;  %v3190_v10 = vadd.f32 %v3189_v9, %v3188_v34  ;;  %v4700_v34 = vadd.f32 %v4488_v43, %v4493_v45  ;;  %v4704_v9 = vadd.f32 %v4490_v44, %v4496_v46  ;;  %v3669_v46 = vld [vmem:[#allocation10 + $0x40] sm:$0xff]  }
 0x361   : > { %v1567_v40 = vadd.f32 %v4695_v24, %v4691_v32  ;;  %3197 = vmatprep.subr.bf16.mxu0 %v3669_v46 }
 0x362   : > { %v4686_v36 = vadd.f32 %v3190_v10, %v4508_v51  ;;  %v1560_v37 = vadd.f32 %v1559_v35, %v4681_v26  ;;  %v1571_v60 = vadd.f32 %v4704_v9, %v4700_v34 }
 0x364   : > { %v3191_v52 = vpop.f32.mrb[60].mxu1  ;;  %1561 = vadd.xlane.f32.xlu0 %v1560_v37  ;;  %v1564_v58 = vadd.f32 %v1563_v22, %v4686_v36 }
 0x365   : > { %v3192_v25 = vpop.f32.mrb[61].mxu1 }
 0x366   : > { %v3193_v35 = vadd.f32 %v3192_v25, %v3191_v52  ;;  %v3194_v38 = vpop.f32.mrb[62].mxu1  ;;  %1565 = vadd.xlane.f32.xlu1 %v1564_v58  ;;  %v3670_v52 = vld [vmem:[#allocation10] sm:$0xff]   ;;  %v3672_v25 = vld [vmem:[#allocation10 + $0x48] sm:$0xff]  }
 0x367   : > { %v3195_v10 = vpop.f32.mrb[63].mxu1  ;;  %v3671_v58 = vld [vmem:[#allocation10 + $0x80] sm:$0xff]   ;;  %3198 = vmatpush3.bf16.msra.mxu0 %v3670_v52 }
 0x368   : > { %v4709_v37 = vadd.f32 %v3193_v35, %v4508_v51  ;;  %v3196_v22 = vadd.f32 %v3195_v10, %v3194_v38  ;;  %3293 = vmatprep.subr.bf16.mxu1 %v3671_v58  ;;  %v3673_v35 = vld [vmem:[#allocation10 + $0x8] sm:$0xff]   ;;  %3199 = vmatprep.subr.bf16.mxu0 %v3672_v25  ;;  %v3677_v38 = vld [vmem:[#allocation10 + $0x90] sm:$0xff]  }
 0x369   : > { %3294 = vmatpush3.bf16.msra.mxu1 %v3671_v58  ;;  %v3676_v10 = vld [vmem:[#allocation10 + $0x10] sm:$0xff]  }
 0x36a   : > { %v4714_v43 = vadd.f32 %v3196_v22, %v4508_v51  ;;  %v1568_v44 = vadd.f32 %v1567_v40, %v4709_v37  ;;  %3295 = vmatprep.subr.bf16.mxu1 %v3674_v28  ;;  %v3675_v51 = vld [vmem:[#allocation10 + $0x50] sm:$0xff]   ;;  %v3680_v40 = vld [vmem:[#allocation10 + $0x98] sm:$0xff]  }
 0x36b   : > { %3200 = vmatpush3.bf16.msra.mxu0 %v3673_v35  ;;  %v3679_v22 = vld [vmem:[#allocation10 + $0x18] sm:$0xff]  }
 0x36c   : > { %1569 = vadd.xlane.f32.xlu0 %v1568_v44  ;;  %v1572_v45 = vadd.f32 %v1571_v60, %v4714_v43  ;;  %3201 = vmatprep.subr.bf16.mxu0 %v3675_v51  ;;  %v3678_v60 = vld [vmem:[#allocation10 + $0x58] sm:$0xff]   ;;  %v3681_v44 = vld [vmem:[#allocation10 + $0x60] sm:$0xff]  }
 0x36d   : > { %3296 = vmatpush3.bf16.msra.mxu1 %v3674_v28 }
 0x36e   : > { %1573 = vadd.xlane.f32.xlu1 %v1572_v45  ;;  %3297 = vmatprep.subr.bf16.mxu1 %v3677_v38 }
 0x36f   : > { %3202 = vmatpush3.bf16.msra.mxu0 %v3676_v10 }
 0x370   : > { %3203 = vmatprep.subr.bf16.mxu0 %v3678_v60 }
 0x371   : > { %3298 = vmatpush3.bf16.msra.mxu1 %v3677_v38 }
 0x372   : > { %3299 = vmatprep.subr.bf16.mxu1 %v3680_v40 }
 0x373   : > { %3204 = vmatpush3.bf16.msra.mxu0 %v3679_v22 }
 0x374   : > { %3205 = vmatprep.subr.bf16.mxu0 %v3681_v44 }
 0x375   : > { %3300 = vmatpush3.bf16.msra.mxu1 %v3680_v40 }
 0x3c1   : > { %v1514_v45 = vpop.xlane.xlu0 %1513 }
 0x3c2   : > { %v1576_v46 = vmul.f32 0.0026041667, %v1514_v45 }
 0x3c4   : > { %v4719_v52 = vsub.f32 %v4502_v48, %v1576_v46  ;;  %v4722_v28 = vsub.f32 %v4505_v49, %v1576_v46  ;;  %v4725_v58 = vsub.f32 %v4517_v61, %v1576_v46 }
 0x3c5   : > { %v1518_v25 = vpop.xlane.xlu0 %1517 }
 0x3c6   : > { %v1577_v35 = vmul.f32 0.0026041667, %v1518_v25  ;;  %v1640_v51 = vmul.f32 %v4719_v52, %v4719_v52  ;;  %v1641_v38 = vmul.f32 %v4722_v28, %v4722_v28  ;;  %v1642_v10 = vmul.f32 %v4725_v58, %v4725_v58 }
 0x3c8   : > { %v4734_v48 = vsub.f32 %v4511_v57, %v1577_v35  ;;  %v4737_v49 = vsub.f32 %v4514_v27, %v1577_v35  ;;  %v4740_v61 = vsub.f32 %v4522_v63, %v1577_v35  ;;  %v1688_v60 = vadd.f32 %v1641_v38, %v1640_v51 }
 0x3c9   : > { %v1522_v40 = vpop.xlane.xlu1 %1521 }
 0x3ca   : > { %v1578_v22 = vmul.f32 0.0026041667, %v1522_v40  ;;  %v1689_v44 = vadd.f32 %v1688_v60, %v1642_v10  ;;  %v1643_v45 = vmul.f32 %v4734_v48, %v4734_v48  ;;  %v1644_v46 = vmul.f32 %v4737_v49, %v4737_v49 }
 0x3cb   : > { %v1645_v57 = vmul.f32 %v4740_v61, %v4740_v61 }
 0x3cc   : > { %v4749_v25 = vsub.f32 %v4528_v2, %v1578_v22  ;;  %v4752_v27 = vsub.f32 %v4531_v3, %v1578_v22  ;;  %v4755_v63 = vsub.f32 %v4541_v41, %v1578_v22  ;;  %1690 = vadd.xlane.f32.xlu0 %v1689_v44  ;;  %v1692_v35 = vadd.f32 %v1644_v46, %v1643_v45 }
 0x3cd   : > { %v1526_v51 = vpop.xlane.xlu1 %1525 }
 0x3ce   : > { %v1579_v38 = vmul.f32 0.0026041667, %v1526_v51  ;;  %v1693_v10 = vadd.f32 %v1692_v35, %v1645_v57  ;;  %v1646_v60 = vmul.f32 %v4749_v25, %v4749_v25  ;;  %v1647_v40 = vmul.f32 %v4752_v27, %v4752_v27 }
 0x3cf   : > { %v1648_v41 = vmul.f32 %v4755_v63, %v4755_v63 }
 0x3d0   : > { %v4762_v2 = vsub.f32 %v4535_v11, %v1579_v38  ;;  %v4765_v3 = vsub.f32 %v4538_v31, %v1579_v38  ;;  %1694 = vadd.xlane.f32.xlu1 %v1693_v10  ;;  %v1696_v22 = vadd.f32 %v1647_v40, %v1646_v60  ;;  %v4770_v44 = vsub.f32 %v4546_v55, %v1579_v38 }
 0x3d1   : > { %v1530_v45 = vpop.xlane.xlu0 %1529 }
 0x3d2   : > { %v1580_v46 = vmul.f32 0.0026041667, %v1530_v45  ;;  %v1697_v57 = vadd.f32 %v1696_v22, %v1648_v41  ;;  %v1649_v35 = vmul.f32 %v4762_v2, %v4762_v2  ;;  %v1650_v11 = vmul.f32 %v4765_v3, %v4765_v3 }
 0x3d3   : > { %v1534_v51 = vpop.xlane.xlu1 %1533  ;;  %v1651_v38 = vmul.f32 %v4770_v44, %v4770_v44 }
 0x3d4   : > { %v4777_v31 = vsub.f32 %v4552_v39, %v1580_v46  ;;  %v4780_v10 = vsub.f32 %v4555_v6, %v1580_v46  ;;  %v1581_v60 = vmul.f32 0.0026041667, %v1534_v51  ;;  %1698 = vadd.xlane.f32.xlu0 %v1697_v57  ;;  %v4783_v55 = vsub.f32 %v4569_v0, %v1580_v46 }
 0x3d5   : > { %v1700_v40 = vadd.f32 %v1650_v11, %v1649_v35 }
 0x3d6   : > { %5352 = vst [vmem:[#allocation22_spill] sm:$0xff] %v4777_v31  ;;  %v4788_v41 = vsub.f32 %v4559_v53, %v1581_v60  ;;  %v4791_v22 = vsub.f32 %v4563_v54, %v1581_v60  ;;  %v1652_v39 = vmul.f32 %v4777_v31, %v4777_v31  ;;  %v4796_v6 = vsub.f32 %v4574_v4, %v1581_v60 }
 0x3d7   : > { %v1701_v45 = vadd.f32 %v1700_v40, %v1651_v38  ;;  %v1653_v0 = vmul.f32 %v4780_v10, %v4780_v10  ;;  %v1654_v54 = vmul.f32 %v4783_v55, %v4783_v55 }
 0x3d8   : > { %5353 = vst [vmem:[#allocation23_spill] sm:$0xff] %v4788_v41  ;;  %5354 = vst [vmem:[#allocation24_spill] sm:$0xff] %v4791_v22  ;;  %v1655_v46 = vmul.f32 %v4788_v41, %v4788_v41  ;;  %v1656_v53 = vmul.f32 %v4791_v22, %v4791_v22  ;;  %v1657_v38 = vmul.f32 %v4796_v6, %v4796_v6 }
 0x3d9   : > { %1702 = vadd.xlane.f32.xlu1 %v1701_v45  ;;  %v1538_v57 = vpop.xlane.xlu0 %1537  ;;  %v1704_v35 = vadd.f32 %v1653_v0, %v1652_v39 }
 0x3da   : > { %v1582_v11 = vmul.f32 0.0026041667, %v1538_v57  ;;  %v1708_v51 = vadd.f32 %v1656_v53, %v1655_v46  ;;  %v3683_v53 = vld [vmem:[#allocation10 + $0xa0] sm:$0xff]  }
 0x3db   : > { %v1542_v4 = vpop.xlane.xlu1 %1541  ;;  %v1705_v60 = vadd.f32 %v1704_v35, %v1654_v54  ;;  %3301 = vmatprep.subr.bf16.mxu1 %v3683_v53 }
 0x3dc   : > { %v4809_v40 = vsub.f32 %v4579_v5, %v1582_v11  ;;  %v4812_v41 = vsub.f32 %v4583_v8, %v1582_v11  ;;  %v1583_v22 = vmul.f32 0.0026041667, %v1542_v4  ;;  %v4815_v45 = vsub.f32 %v4597_v50, %v1582_v11  ;;  %v3682_v5 = vld [vmem:[#allocation10 + $0x20] sm:$0xff]   ;;  %3302 = vmatpush3.bf16.msra.mxu1 %v3683_v53 }
 0x3dd   : > { %1706 = vadd.xlane.f32.xlu0 %v1705_v60  ;;  %v1709_v31 = vadd.f32 %v1708_v51, %v1657_v38  ;;  %3206 = vmatpush3.bf16.msra.mxu0 %v3682_v5 }
 0x3de   : > { %v4818_v39 = vsub.f32 %v4588_v33, %v1583_v22  ;;  %v4821_v0 = vsub.f32 %v4592_v42, %v1583_v22  ;;  %v1658_v46 = vmul.f32 %v4809_v40, %v4809_v40  ;;  %v4826_v8 = vsub.f32 %v4602_v19, %v1583_v22 }
 0x3df   : > { %1710 = vadd.xlane.f32.xlu1 %v1709_v31  ;;  %v1659_v50 = vmul.f32 %v4812_v41, %v4812_v41  ;;  %v1660_v54 = vmul.f32 %v4815_v45, %v4815_v45  ;;  %v3684_v31 = vld [vmem:[#allocation10 + $0x68] sm:$0xff]  }
 0x3e0   : > { %5355 = vst [vmem:[#allocation25_spill] sm:$0xff] %v4818_v39  ;;  %v1661_v57 = vmul.f32 %v4818_v39, %v4818_v39  ;;  %v1662_v33 = vmul.f32 %v4821_v0, %v4821_v0  ;;  %v1663_v4 = vmul.f32 %v4826_v8, %v4826_v8  ;;  %3207 = vmatprep.subr.bf16.mxu0 %v3684_v31 }
 0x3e1   : > { %v1546_v42 = vpop.xlane.xlu0 %1545  ;;  %v1712_v35 = vadd.f32 %v1659_v50, %v1658_v46 }
 0x3e2   : > { %v1584_v19 = vmul.f32 0.0026041667, %v1546_v42  ;;  %v1716_v22 = vadd.f32 %v1662_v33, %v1661_v57  ;;  %v3685_v57 = vld [vmem:[#allocation10 + $0x28] sm:$0xff]  }
 0x3e3   : > { %v1550_v11 = vpop.xlane.xlu1 %1549  ;;  %v1713_v51 = vadd.f32 %v1712_v35, %v1660_v54  ;;  %v3686_v33 = vld [vmem:[#allocation10 + $0xa8] sm:$0xff]   ;;  %3208 = vmatpush3.bf16.msra.mxu0 %v3685_v57 }
 0x3e4   : > { %v4839_v60 = vsub.f32 %v4607_v59, %v1584_v19  ;;  %v4842_v38 = vsub.f32 %v4611_v62, %v1584_v19  ;;  %v1585_v5 = vmul.f32 0.0026041667, %v1550_v11  ;;  %v4845_v39 = vsub.f32 %v4625_v12, %v1584_v19  ;;  %3303 = vmatprep.subr.bf16.mxu1 %v3686_v33 }
 0x3e5   : > { %1714 = vadd.xlane.f32.xlu0 %v1713_v51  ;;  %v1717_v46 = vadd.f32 %v1716_v22, %v1663_v4  ;;  %3304 = vmatpush3.bf16.msra.mxu1 %v3686_v33  ;;  %v3687_v51 = vld [vmem:[#allocation10 + $0x70] sm:$0xff]  }
 0x3e6   : > { %v4848_v53 = vsub.f32 %v4616_v15, %v1585_v5  ;;  %v4851_v50 = vsub.f32 %v4620_v16, %v1585_v5  ;;  %v1664_v59 = vmul.f32 %v4839_v60, %v4839_v60  ;;  %v4856_v62 = vsub.f32 %v4630_v23, %v1585_v5  ;;  %3209 = vmatprep.subr.bf16.mxu0 %v3687_v51 }
 0x3e7   : > { %1718 = vadd.xlane.f32.xlu1 %v1717_v46  ;;  %v1665_v12 = vmul.f32 %v4842_v38, %v4842_v38  ;;  %v1666_v54 = vmul.f32 %v4845_v39, %v4845_v39 }
 0x3e8   : > { %v1667_v42 = vmul.f32 %v4848_v53, %v4848_v53  ;;  %v1668_v15 = vmul.f32 %v4851_v50, %v4851_v50  ;;  %v1669_v11 = vmul.f32 %v4856_v62, %v4856_v62 }
 0x3e9   : > { %v1554_v16 = vpop.xlane.xlu0 %1553  ;;  %v1720_v35 = vadd.f32 %v1665_v12, %v1664_v59 }
 0x3ea   : > { %v1586_v23 = vmul.f32 0.0026041667, %v1554_v16  ;;  %v1724_v19 = vadd.f32 %v1668_v15, %v1667_v42  ;;  %v3688_v42 = vld [vmem:[#allocation10 + $0x30] sm:$0xff]  }
 0x3eb   : > { %v1558_v22 = vpop.xlane.xlu1 %1557  ;;  %v1721_v31 = vadd.f32 %v1720_v35, %v1666_v54  ;;  %3210 = vmatpush3.bf16.msra.mxu0 %v3688_v42  ;;  %v3689_v35 = vld [vmem:[#allocation10 + $0xb0] sm:$0xff]  }
 0x3ec   : > { %v4869_v4 = vsub.f32 %v4635_v7, %v1586_v23  ;;  %v4872_v5 = vsub.f32 %v4639_v18, %v1586_v23  ;;  %v1587_v46 = vmul.f32 0.0026041667, %v1558_v22  ;;  %v4875_v57 = vsub.f32 %v4653_v21, %v1586_v23  ;;  %v3690_v23 = vld [vmem:[#allocation10 + $0x78] sm:$0xff]   ;;  %3305 = vmatprep.subr.bf16.mxu1 %v3689_v35 }
 0x3ed   : > { %1722 = vadd.xlane.f32.xlu0 %v1721_v31  ;;  %v1725_v59 = vadd.f32 %v1724_v19, %v1669_v11  ;;  %v3691_v22 = vld [vmem:[#allocation10 + $0x38] sm:$0xff]   ;;  %3211 = vmatprep.subr.bf16.mxu0 %v3690_v23 }
 0x3ee   : > { %v4878_v33 = vsub.f32 %v4644_v13, %v1587_v46  ;;  %v4881_v12 = vsub.f32 %v4648_v14, %v1587_v46  ;;  %v1670_v7 = vmul.f32 %v4869_v4, %v4869_v4  ;;  %v4886_v18 = vsub.f32 %v4658_v29, %v1587_v46  ;;  %3306 = vmatpush3.bf16.msra.mxu1 %v3689_v35 }
 0x3ef   : > { %1726 = vadd.xlane.f32.xlu1 %v1725_v59  ;;  %v1671_v21 = vmul.f32 %v4872_v5, %v4872_v5  ;;  %v1672_v16 = vmul.f32 %v4875_v57, %v4875_v57  ;;  %3212 = vmatpush3.bf16.msra.mxu0 %v3691_v22 }
 0x3f0   : > { %v1673_v15 = vmul.f32 %v4878_v33, %v4878_v33  ;;  %v1674_v13 = vmul.f32 %v4881_v12, %v4881_v12  ;;  %v1675_v51 = vmul.f32 %v4886_v18, %v4886_v18 }
 0x3f1   : > { %v1562_v14 = vpop.xlane.xlu0 %1561  ;;  %v1728_v54 = vadd.f32 %v1671_v21, %v1670_v7 }
 0x3f2   : > { %v1588_v29 = vmul.f32 0.0026041667, %v1562_v14  ;;  %v1732_v19 = vadd.f32 %v1674_v13, %v1673_v15 }
 0x3f3   : > { %v1566_v31 = vpop.xlane.xlu1 %1565  ;;  %v1729_v11 = vadd.f32 %v1728_v54, %v1672_v16  ;;  %v3692_v16 = vld [vmem:[#allocation10 + $0xb8] sm:$0xff]  }
 0x3f4   : > { %v4899_v46 = vsub.f32 %v4663_v56, %v1588_v29  ;;  %v4902_v59 = vsub.f32 %v4667_v17, %v1588_v29  ;;  %v1589_v42 = vmul.f32 0.0026041667, %v1566_v31  ;;  %v4905_v7 = vsub.f32 %v4681_v26, %v1588_v29  ;;  %3307 = vmatprep.subr.bf16.mxu1 %v3692_v16 }
 0x3f5   : > { %1730 = vadd.xlane.f32.xlu0 %v1729_v11  ;;  %v1733_v21 = vadd.f32 %v1732_v19, %v1675_v51  ;;  %3308 = vmatpush3.bf16.msra.mxu1 %v3692_v16 }
 0x3f6   : > { %v4908_v15 = vsub.f32 %v4672_v20, %v1589_v42  ;;  %v4911_v13 = vsub.f32 %v4676_v1, %v1589_v42  ;;  %v1676_v56 = vmul.f32 %v4899_v46, %v4899_v46  ;;  %v4916_v17 = vsub.f32 %v4686_v36, %v1589_v42 }
 0x3f7   : > { %1734 = vadd.xlane.f32.xlu1 %v1733_v21  ;;  %v1677_v14 = vmul.f32 %v4902_v59, %v4902_v59  ;;  %v1678_v1 = vmul.f32 %v4905_v7, %v4905_v7 }
 0x3f8   : > { %v1679_v26 = vmul.f32 %v4908_v15, %v4908_v15  ;;  %v1680_v20 = vmul.f32 %v4911_v13, %v4911_v13  ;;  %v1681_v22 = vmul.f32 %v4916_v17, %v4916_v17 }
 0x3f9   : > { %v1570_v54 = vpop.xlane.xlu0 %1569  ;;  %v1736_v35 = vadd.f32 %v1677_v14, %v1676_v56 }
 0x3fa   : > { %v1590_v23 = vmul.f32 0.0026041667, %v1570_v54  ;;  %v1740_v29 = vadd.f32 %v1680_v20, %v1679_v26 }
 0x3fb   : > { %v1574_v36 = vpop.xlane.xlu1 %1573  ;;  %v1737_v19 = vadd.f32 %v1736_v35, %v1678_v1  ;;  %v3695_v35 = vld [vmem:[#allocation11 + $0x4] ss:$12 sps:$4 sm:$0xff]  }
 0x3fc   : > { %v4929_v31 = vsub.f32 %v4691_v32, %v1590_v23  ;;  %v4932_v11 = vsub.f32 %v4695_v24, %v1590_v23  ;;  %v1591_v51 = vmul.f32 0.0026041667, %v1574_v36  ;;  %v4935_v42 = vsub.f32 %v4709_v37, %v1590_v23  ;;  %v4958_v23 = vld [vmem:[#allocation11 + $0x8] ss:$12 sps:$4 sm:$0xff]   ;;  %2573 = vmatprep.subr.bf16.mxu1 %v3695_v35 }
 0x3fd   : > { %1738 = vadd.xlane.f32.xlu0 %v1737_v19  ;;  %v1741_v21 = vadd.f32 %v1740_v29, %v1681_v22  ;;  %3325 = vmatprep.subr.bf16.mxu0 %v4958_v23  ;;  %v1510_v35 = vld [vmem:[#allocation5 + $0x3] ss:$8 sm:$0x7] }
 0x3fe   : > { %5356 = vst [vmem:[#allocation26_spill] sm:$0xff] %v4929_v31  ;;  %v4938_v56 = vsub.f32 %v4700_v34, %v1591_v51  ;;  %v4941_v14 = vsub.f32 %v4704_v9, %v1591_v51  ;;  %v4944_v26 = vsub.f32 %v4714_v43, %v1591_v51  ;;  %v1682_v32 = vmul.f32 %v4929_v31, %v4929_v31 }
 0x3ff   : > { %1742 = vadd.xlane.f32.xlu1 %v1741_v21  ;;  %v1683_v24 = vmul.f32 %v4932_v11, %v4932_v11  ;;  %v1684_v9 = vmul.f32 %v4935_v42, %v4935_v42 }
 0x400   : > { %5357 = vst [vmem:[#allocation27_spill] sm:$0xff] %v4938_v56  ;;  %5358 = vst [vmem:[#allocation28_spill] sm:$0xff] %v4944_v26  ;;  %v1685_v37 = vmul.f32 %v4938_v56, %v4938_v56  ;;  %v1686_v34 = vmul.f32 %v4941_v14, %v4941_v14  ;;  %v1687_v43 = vmul.f32 %v4944_v26, %v4944_v26 }
 0x401   : > { %v1744_v20 = vadd.f32 %v1683_v24, %v1682_v32  ;;  %v4975_v56 = vrot.slane %v1510_v35, %v4376_v30 }
 0x402   : > { %v1748_v16 = vadd.f32 %v1686_v34, %v1685_v37  ;;  %v1508_v34 = vld [vmem:[#allocation5 + $0x2] ss:$8 sm:$0x7] }
 0x403   : > { %v1745_v54 = vadd.f32 %v1744_v20, %v1684_v9 }
 0x404   : > { %v1749_v1 = vadd.f32 %v1748_v16, %v1687_v43  ;;  %v4962_v16 = vrot.slane %v1508_v34, %v4376_v30 }
 0x405   : > { %1746 = vadd.xlane.f32.xlu0 %v1745_v54  ;;  %v4965_v54 = vrot.slane %v1508_v34, %v4499_v47 }
 0x406   : > { %1750 = vadd.xlane.f32.xlu1 %v1749_v1 }
 0x459   : > { %v1691_v29 = vpop.xlane.xlu0 %1690 }
 0x45a   : > { %v1752_v36 = vmul.f32 0.0026041667, %v1691_v29 }
 0x45c   : > { %v1768_v19 = vadd.f32 1e-05, %v1752_v36 }
 0x45d   : > { %v1695_v22 = vpop.xlane.xlu1 %1694 }
 0x45e   : > { %3725 = vrsqrt.f32 %v1768_v19  ;;  %v1753_v51 = vmul.f32 0.0026041667, %v1695_v22  ;;  %v5359_v22 = vld [vmem:[#allocation19_spill] sm:$0xff] }
 0x460   : > { %v1769_v21 = vadd.f32 1e-05, %v1753_v51  ;;  %v4970_v51 = vrot.slane %v1508_v34, %v5359_v22 }
 0x461   : > { %v1699_v32 = vpop.xlane.xlu0 %1698 }
 0x462   : > { %3727 = vrsqrt.f32 %v1769_v21  ;;  %v1754_v24 = vmul.f32 0.0026041667, %v1699_v32 }
 0x464   : > { %v1770_v37 = vadd.f32 1e-05, %v1754_v24 }
 0x466   : > { %3729 = vrsqrt.f32 %v1770_v37  ;;  %v1703_v9 = vpop.xlane.xlu1 %1702 }
 0x467   : > { %v1755_v20 = vmul.f32 0.0026041667, %v1703_v9 }
 0x468   : > { %v3726_v43 = vpop.eup %3725 }
 0x469   : > { %v1771_v1 = vadd.f32 1e-05, %v1755_v20  ;;  %v1801_v29 = vmul.f32 %v3726_v43, %v4722_v28  ;;  %v1802_v36 = vmul.f32 %v3726_v43, %v4725_v58  ;;  %v1800_v21 = vmul.f32 %v3726_v43, %v4719_v52 }
 0x46a   : > { %v1707_v19 = vpop.xlane.xlu0 %1706  ;;  %v4979_v28 = vrot.slane %v1510_v35, %v4499_v47  ;;  %v4983_v52 = vrot.slane %v1510_v35, %v5359_v22  ;;  %v3703_v22 = vld [vmem:[#allocation11 + $0x20] ss:$12 sps:$4 sm:$0xff]  }
 0x46b   : > { %3731 = vrsqrt.f32 %v1771_v1  ;;  %v1756_v32 = vmul.f32 0.0026041667, %v1707_v19  ;;  %v1865_v9 = vmul.f32 %v4962_v16, %v1801_v29  ;;  %v1866_v20 = vmul.f32 %v4965_v54, %v1802_v36 }
 0x46c   : > { %v3728_v24 = vpop.eup %3727  ;;  %v1711_v37 = vpop.xlane.xlu1 %1710  ;;  %v1864_v29 = vmul.f32 %v4970_v51, %v1800_v21 }
 0x46d   : > { %v1772_v58 = vadd.f32 1e-05, %v1756_v32  ;;  %v1757_v31 = vmul.f32 0.0026041667, %v1711_v37  ;;  %v1804_v34 = vmul.f32 %v3728_v24, %v4737_v49  ;;  %v1805_v43 = vmul.f32 %v3728_v24, %v4740_v61 }
 0x46e   : > { %v1803_v1 = vmul.f32 %v3728_v24, %v4734_v48  ;;  %v1929_v47 = vadd.f32 %v4975_v56, %v1865_v9  ;;  %v1930_v49 = vadd.f32 %v4979_v28, %v1866_v20  ;;  %v1928_v37 = vadd.f32 %v4983_v52, %v1864_v29 }
 0x46f   : > { %3733 = vrsqrt.f32 %v1772_v58  ;;  %v1773_v19 = vadd.f32 1e-05, %v1757_v31  ;;  %v1868_v36 = vmul.f32 %v4962_v16, %v1804_v34  ;;  %v1869_v32 = vmul.f32 %v4965_v54, %v1805_v43 }
 0x470   : > { %v3730_v30 = vpop.eup %3729  ;;  %v1867_v35 = vmul.f32 %v4970_v51, %v1803_v1 }
 0x471   : > { %3735 = vrsqrt.f32 %v1773_v19  ;;  %v1932_v61 = vadd.f32 %v4975_v56, %v1868_v36  ;;  %v1807_v48 = vmul.f32 %v3730_v30, %v4752_v27  ;;  %v1808_v21 = vmul.f32 %v3730_v30, %v4755_v63 }
 0x472   : > { %v1715_v24 = vpop.xlane.xlu0 %1714  ;;  %v1933_v31 = vadd.f32 %v4979_v28, %v1869_v32  ;;  %v1931_v9 = vadd.f32 %v4983_v52, %v1867_v35  ;;  %v1806_v58 = vmul.f32 %v3730_v30, %v4749_v25 }
 0x473   : > { %v1758_v34 = vmul.f32 0.0026041667, %v1715_v24  ;;  %v2026_v20 = vpack.c.bf16 %v1932_v61, %v1929_v47  ;;  %v1871_v36 = vmul.f32 %v4962_v16, %v1807_v48  ;;  %v1872_v32 = vmul.f32 %v4965_v54, %v1808_v21  ;;  %v3707_v21 = vld [vmem:[#allocation11 + $0x38] ss:$12 sps:$4 sm:$0xff]  }
 0x474   : > { %v1719_v43 = vpop.xlane.xlu1 %1718  ;;  %v2027_v1 = vpack.c.bf16 %v1933_v31, %v1930_v49  ;;  %v2025_v19 = vpack.c.bf16 %v1931_v9, %v1928_v37  ;;  %v1870_v29 = vmul.f32 %v4970_v51, %v1806_v58 }
 0x475   : > { %v3732_v27 = vpop.eup %3731  ;;  %v1774_v26 = vadd.f32 1e-05, %v1758_v34  ;;  %v1759_v63 = vmul.f32 0.0026041667, %v1719_v43  ;;  %2225 = vmatprep.mubr.bf16.mxu0 %v2026_v20  ;;  %v5360_v43 = vld [vmem:[#allocation22_spill] sm:$0xff] }
 0x476   : > { %3309 = vmatprep.mubr.bf16.mxu1 %v2027_v1  ;;  %2226 = vmatmul.mubr.bf16.vlgmr.msra.gmra.mrb[32].mxu0 %v2025_v19  ;;  %v1810_v30 = vmul.f32 %v3732_v27, %v4765_v3  ;;  %v1811_v47 = vmul.f32 %v3732_v27, %v4770_v44  ;;  %v1809_v25 = vmul.f32 %v3732_v27, %v4762_v2  ;;  %v3693_v19 = vld [vmem:[#allocation11] ss:$12 sps:$4 sm:$0xff]  }
 0x477   : > { %3737 = vrsqrt.f32 %v1774_v26  ;;  %v1775_v49 = vadd.f32 1e-05, %v1759_v63  ;;  %3326 = vmatpush3.bf16.msra.mxu0 %v4958_v23  ;;  %v1935_v3 = vadd.f32 %v4975_v56, %v1871_v36  ;;  %v1936_v44 = vadd.f32 %v4979_v28, %v1872_v32 }
 0x478   : > { %v1874_v35 = vmul.f32 %v4962_v16, %v1810_v30  ;;  %v1875_v61 = vmul.f32 %v4965_v54, %v1811_v47  ;;  %v1873_v48 = vmul.f32 %v4970_v51, %v1809_v25  ;;  %3327 = vmatprep.subr.bf16.mxu0 %v3703_v22  ;;  %v1934_v2 = vadd.f32 %v4983_v52, %v1870_v29  ;;  %v5361_v29 = vld [vmem:[#allocation24_spill] sm:$0xff] }
 0x479   : > { %v3734_v24 = vpop.eup %3733  ;;  %3739 = vrsqrt.f32 %v1775_v49  ;;  %v3699_v47 = vld [vmem:[#allocation11 + $0x1c] ss:$12 sps:$4 sm:$0xff]  }
 0x47a   : > { %v1723_v26 = vpop.xlane.xlu0 %1722  ;;  %v1938_v31 = vadd.f32 %v4975_v56, %v1874_v35  ;;  %v1939_v23 = vadd.f32 %v4979_v28, %v1875_v61  ;;  %v1937_v37 = vadd.f32 %v4983_v52, %v1873_v48  ;;  %v1813_v9 = vmul.f32 %v3734_v24, %v4780_v10  ;;  %v5362_v61 = vld [vmem:[#allocation23_spill] sm:$0xff] }
 0x47b   : > { %v3736_v58 = vpop.eup %3735  ;;  %v1760_v34 = vmul.f32 0.0026041667, %v1723_v26  ;;  %v1814_v20 = vmul.f32 %v3734_v24, %v4783_v55  ;;  %v1812_v1 = vmul.f32 %v3734_v24, %v5360_v43  ;;  %3328 = vmatpush3.bf16.msra.mxu0 %v3703_v22 }
 0x47c   : > { %v1727_v36 = vpop.xlane.xlu1 %1726  ;;  %v2029_v27 = vpack.c.bf16 %v1938_v31, %v1935_v3  ;;  %v2030_v63 = vpack.c.bf16 %v1939_v23, %v1936_v44  ;;  %v2028_v32 = vpack.c.bf16 %v1937_v37, %v1934_v2  ;;  %v1816_v30 = vmul.f32 %v3736_v58, %v5361_v29  ;;  %3329 = vmatprep.subr.bf16.mxu0 %v3707_v21  ;;  %v3697_v44 = vld [vmem:[#allocation11 + $0x18] ss:$12 sps:$4 sm:$0xff]  }
 0x47d   : > { %v1776_v25 = vadd.f32 1e-05, %v1760_v34  ;;  %v1761_v49 = vmul.f32 0.0026041667, %v1727_v36  ;;  %v1877_v10 = vmul.f32 %v4962_v16, %v1813_v9  ;;  %v1817_v35 = vmul.f32 %v3736_v58, %v4796_v6 }
 0x47e   : > { %2233 = vmatprep.mubr.bf16.mxu0 %v2029_v27  ;;  %3310 = vmatmul.mubr.bf16.vlgmr.msra.gmra.mrb[64].mxu1 %v2030_v63  ;;  %v1880_v55 = vmul.f32 %v4962_v16, %v1816_v30  ;;  %v1878_v22 = vmul.f32 %v4965_v54, %v1814_v20  ;;  %v1815_v48 = vmul.f32 %v3736_v58, %v5362_v61  ;;  %v3702_v58 = vld [vmem:[#allocation11 + $0x34] ss:$12 sps:$4 sm:$0xff]   ;;  %v3700_v30 = vld [vmem:[#allocation11 + $0x30] ss:$12 sps:$4 sm:$0xff]  }
 0x47f   : > { %3741 = vrsqrt.f32 %v1776_v25  ;;  %v1777_v24 = vadd.f32 1e-05, %v1761_v49  ;;  %2234 = vmatmul.mubr.bf16.gmra.mrb[36].mxu0 %v2028_v32  ;;  %v1881_v3 = vmul.f32 %v4965_v54, %v1817_v35  ;;  %2574 = vmatpush1.bf16.msra.mxu1 %v3693_v19  ;;  %v1941_v2 = vadd.f32 %v4975_v56, %v1877_v10  ;;  %v3706_v35 = vld [vmem:[#allocation11 + $0x4c] ss:$12 sps:$4 sm:$0xff]  }
 0x480   : > { %v1944_v26 = vadd.f32 %v4975_v56, %v1880_v55  ;;  %v1876_v6 = vmul.f32 %v4970_v51, %v1812_v1  ;;  %v1879_v31 = vmul.f32 %v4970_v51, %v1815_v48  ;;  %2575 = vmatprep.subr.bf16.mxu1 %v3699_v47  ;;  %v1942_v37 = vadd.f32 %v4979_v28, %v1878_v22 }
 0x481   : > { %v3738_v23 = vpop.eup %3737  ;;  %3743 = vrsqrt.f32 %v1777_v24  ;;  %v1945_v9 = vadd.f32 %v4979_v28, %v1881_v3  ;;  %3330 = vmatpush3.bf16.msra.mxu0 %v3707_v21  ;;  %v3704_v3 = vld [vmem:[#allocation11 + $0x48] ss:$12 sps:$4 sm:$0xff]  }
 0x482   : > { %v1731_v34 = vpop.xlane.xlu0 %1730  ;;  %v2032_v20 = vpack.c.bf16 %v1944_v26, %v1941_v2  ;;  %v1940_v43 = vadd.f32 %v4983_v52, %v1876_v6  ;;  %v1943_v19 = vadd.f32 %v4983_v52, %v1879_v31  ;;  %v1819_v36 = vmul.f32 %v3738_v23, %v4812_v41 }
 0x483   : > { %v3740_v1 = vpop.eup %3739  ;;  %v1762_v27 = vmul.f32 0.0026041667, %v1731_v34  ;;  %v2033_v63 = vpack.c.bf16 %v1945_v9, %v1942_v37  ;;  %v1820_v32 = vmul.f32 %v3738_v23, %v4815_v45  ;;  %v1818_v29 = vmul.f32 %v3738_v23, %v4809_v40  ;;  %2576 = vmatpush1.bf16.msra.mxu1 %v3697_v44  ;;  %v5363_v45 = vld [vmem:[#allocation25_spill] sm:$0xff] }
 0x484   : > { %v1735_v47 = vpop.xlane.xlu1 %1734  ;;  %2241 = vmatprep.mubr.bf16.mxu0 %v2032_v20  ;;  %v2031_v21 = vpack.c.bf16 %v1943_v19, %v1940_v43  ;;  %v1822_v25 = vmul.f32 %v3740_v1, %v4821_v0  ;;  %v1883_v49 = vmul.f32 %v4962_v16, %v1819_v36  ;;  %v1823_v10 = vmul.f32 %v3740_v1, %v4826_v8  ;;  %v3710_v9 = vld [vmem:[#allocation11 + $0x64] ss:$12 sps:$4 sm:$0xff]  }
 0x485   : > { %v1778_v41 = vadd.f32 1e-05, %v1762_v27  ;;  %v1763_v55 = vmul.f32 0.0026041667, %v1735_v47  ;;  %3313 = vmatprep.mubr.bf16.mxu1 %v2033_v63  ;;  %v1884_v22 = vmul.f32 %v4965_v54, %v1820_v32  ;;  %v1821_v61 = vmul.f32 %v3740_v1, %v5363_v45  ;;  %2577 = vmatprep.subr.bf16.mxu1 %v3702_v58  ;;  %v3708_v32 = vld [vmem:[#allocation11 + $0x60] ss:$12 sps:$4 sm:$0xff]  }
 0x486   : > { %v1886_v40 = vmul.f32 %v4962_v16, %v1822_v25  ;;  %v1887_v48 = vmul.f32 %v4965_v54, %v1823_v10  ;;  %v1882_v24 = vmul.f32 %v4970_v51, %v1818_v29  ;;  %v1947_v44 = vadd.f32 %v4975_v56, %v1883_v49 }
 0x487   : > { %3745 = vrsqrt.f32 %v1778_v41  ;;  %v1779_v0 = vadd.f32 1e-05, %v1763_v55  ;;  %2242 = vmatmul.mubr.bf16.gmra.mrb[40].mxu0 %v2031_v21  ;;  %v1885_v8 = vmul.f32 %v4970_v51, %v1821_v61  ;;  %2578 = vmatpush1.bf16.msra.mxu1 %v3700_v30  ;;  %v1948_v26 = vadd.f32 %v4979_v28, %v1884_v22 }
 0x488   : > { %v1950_v2 = vadd.f32 %v4975_v56, %v1886_v40  ;;  %v1951_v6 = vadd.f32 %v4979_v28, %v1887_v48  ;;  %2579 = vmatprep.subr.bf16.mxu1 %v3706_v35  ;;  %v1946_v23 = vadd.f32 %v4983_v52, %v1882_v24 }
 0x489   : > { %v3742_v31 = vpop.eup %3741  ;;  %3747 = vrsqrt.f32 %v1779_v0  ;;  %v1949_v37 = vadd.f32 %v4983_v52, %v1885_v8 }
 0x48a   : > { %v1739_v58 = vpop.xlane.xlu0 %1738  ;;  %v2035_v34 = vpack.c.bf16 %v1950_v2, %v1947_v44  ;;  %v2036_v20 = vpack.c.bf16 %v1951_v6, %v1948_v26  ;;  %v1825_v43 = vmul.f32 %v3742_v31, %v4842_v38  ;;  %v1826_v19 = vmul.f32 %v3742_v31, %v4845_v39 }
 0x48b   : > { %v3744_v36 = vpop.eup %3743  ;;  %v1764_v1 = vmul.f32 0.0026041667, %v1739_v58  ;;  %v2034_v27 = vpack.c.bf16 %v1949_v37, %v1946_v23  ;;  %v1824_v63 = vmul.f32 %v3742_v31, %v4839_v60  ;;  %2580 = vmatpush1.bf16.msra.mxu1 %v3704_v3 }
 0x48c   : > { %v1743_v29 = vpop.xlane.xlu1 %1742  ;;  %2249 = vmatprep.mubr.bf16.mxu0 %v2035_v34  ;;  %3314 = vmatmul.mubr.bf16.gmra.mrb[68].mxu1 %v2036_v20  ;;  %v1828_v30 = vmul.f32 %v3744_v36, %v4851_v50  ;;  %v1889_v47 = vmul.f32 %v4962_v16, %v1825_v43  ;;  %v1829_v21 = vmul.f32 %v3744_v36, %v4856_v62 }
 0x48d   : > { %v1780_v25 = vadd.f32 1e-05, %v1764_v1  ;;  %v1765_v38 = vmul.f32 0.0026041667, %v1743_v29  ;;  %v1890_v39 = vmul.f32 %v4965_v54, %v1826_v19  ;;  %v1827_v49 = vmul.f32 %v3744_v36, %v4848_v53  ;;  %2581 = vmatprep.subr.bf16.mxu1 %v3710_v9 }
 0x48e   : > { %v1892_v60 = vmul.f32 %v4962_v16, %v1828_v30  ;;  %v1893_v10 = vmul.f32 %v4965_v54, %v1829_v21  ;;  %v1888_v50 = vmul.f32 %v4970_v51, %v1824_v63  ;;  %v1953_v62 = vadd.f32 %v4975_v56, %v1889_v47 }
 0x48f   : > { %3749 = vrsqrt.f32 %v1780_v25  ;;  %v1781_v35 = vadd.f32 1e-05, %v1765_v38  ;;  %2250 = vmatmul.mubr.bf16.gmra.mrb[44].mxu0 %v2034_v27  ;;  %v1891_v41 = vmul.f32 %v4970_v51, %v1827_v49  ;;  %2582 = vmatpush1.bf16.msra.mxu1 %v3708_v32  ;;  %v1954_v22 = vadd.f32 %v4979_v28, %v1890_v39 }
 0x490   : > { %v1956_v55 = vadd.f32 %v4975_v56, %v1892_v60  ;;  %v1957_v53 = vadd.f32 %v4979_v28, %v1893_v10  ;;  %v1952_v26 = vadd.f32 %v4983_v52, %v1888_v50 }
 0x491   : > { %v3746_v45 = vpop.eup %3745  ;;  %3751 = vrsqrt.f32 %v1781_v35  ;;  %v1955_v61 = vadd.f32 %v4983_v52, %v1891_v41 }
 0x492   : > { %v1747_v40 = vpop.xlane.xlu0 %1746  ;;  %v2038_v48 = vpack.c.bf16 %v1956_v55, %v1953_v62  ;;  %v2039_v24 = vpack.c.bf16 %v1957_v53, %v1954_v22  ;;  %v1831_v0 = vmul.f32 %v3746_v45, %v4872_v5  ;;  %v1832_v8 = vmul.f32 %v3746_v45, %v4875_v57 }
 0x493   : > { %v3748_v3 = vpop.eup %3747  ;;  %v1766_v44 = vmul.f32 0.0026041667, %v1747_v40  ;;  %v1751_v2 = vpop.xlane.xlu1 %1750  ;;  %v1830_v6 = vmul.f32 %v3746_v45, %v4869_v4  ;;  %v2037_v5 = vpack.c.bf16 %v1955_v61, %v1952_v26 }
 0x494   : > { %v1767_v31 = vmul.f32 0.0026041667, %v1751_v2  ;;  %2257 = vmatprep.mubr.bf16.mxu0 %v2038_v48  ;;  %3317 = vmatprep.mubr.bf16.mxu1 %v2039_v24  ;;  %v1834_v23 = vmul.f32 %v3748_v3, %v4881_v12  ;;  %v1895_v37 = vmul.f32 %v4962_v16, %v1831_v0  ;;  %v1835_v9 = vmul.f32 %v3748_v3, %v4886_v18 }
 0x495   : > { %v1782_v58 = vadd.f32 1e-05, %v1766_v44  ;;  %v1896_v57 = vmul.f32 %v4965_v54, %v1832_v8  ;;  %v1833_v34 = vmul.f32 %v3748_v3, %v4878_v33  ;;  %v1894_v12 = vmul.f32 %v4970_v51, %v1830_v6  ;;  %v5364_v8 = vld [vmem:[#allocation28_spill] sm:$0xff]  ;;  %v5365_v44 = vld [vmem:[#allocation26_spill] sm:$0xff] }
 0x496   : > { %v1783_v20 = vadd.f32 1e-05, %v1767_v31  ;;  %v1898_v43 = vmul.f32 %v4962_v16, %v1834_v23  ;;  %v1899_v4 = vmul.f32 %v4965_v54, %v1835_v9  ;;  %v1959_v19 = vadd.f32 %v4975_v56, %v1895_v37  ;;  %v5366_v31 = vld [vmem:[#allocation27_spill] sm:$0xff] }
 0x497   : > { %3753 = vrsqrt.f32 %v1782_v58  ;;  %2258 = vmatmul.mubr.bf16.gmra.mrb[48].mxu0 %v2037_v5  ;;  %v1897_v36 = vmul.f32 %v4970_v51, %v1833_v34  ;;  %v1960_v1 = vadd.f32 %v4979_v28, %v1896_v57  ;;  %v1958_v25 = vadd.f32 %v4983_v52, %v1894_v12  ;;  %v3714_v12 = vld [vmem:[#allocation11 + $0x7c] ss:$12 sps:$4 sm:$0xff]  }
 0x498   : > { %3755 = vrsqrt.f32 %v1783_v20  ;;  %v1962_v18 = vadd.f32 %v4975_v56, %v1898_v43  ;;  %v1963_v33 = vadd.f32 %v4979_v28, %v1899_v4  ;;  %2583 = vmatprep.subr.bf16.mxu1 %v3714_v12 }
 0x499   : > { %v3750_v27 = vpop.eup %3749  ;;  %v1961_v63 = vadd.f32 %v4983_v52, %v1897_v36  ;;  %v3715_v36 = vld [vmem:[#allocation11 + $0x68] ss:$12 sps:$4 sm:$0xff]  }
 0x49a   : > { %v2041_v32 = vpack.c.bf16 %v1962_v18, %v1959_v19  ;;  %v2042_v29 = vpack.c.bf16 %v1963_v33, %v1960_v1  ;;  %v1837_v30 = vmul.f32 %v3750_v27, %v4902_v59  ;;  %v1838_v47 = vmul.f32 %v3750_v27, %v4905_v7  ;;  %v3711_v19 = vld [vmem:[#allocation11 + $0x50] ss:$12 sps:$4 sm:$0xff]   ;;  %v3718_v18 = vld [vmem:[#allocation11 + $0x94] ss:$12 sps:$4 sm:$0xff]  }
 0x49b   : > { %v3752_v21 = vpop.eup %3751  ;;  %v1836_v38 = vmul.f32 %v3750_v27, %v4899_v46  ;;  %v2040_v10 = vpack.c.bf16 %v1961_v63, %v1958_v25  ;;  %3331 = vmatprep.subr.bf16.mxu0 %v3711_v19  ;;  %v3719_v1 = vld [vmem:[#allocation11 + $0x80] ss:$12 sps:$4 sm:$0xff]   ;;  %v3720_v33 = vld [vmem:[#allocation11 + $0xa8] ss:$12 sps:$4 sm:$0xff]   ;;  %v3723_v27 = vld [vmem:[#allocation11 + $0x98] ss:$12 sps:$4 sm:$0xff]  }
 0x49c   : > { %2265 = vmatprep.mubr.bf16.mxu0 %v2041_v32  ;;  %3318 = vmatmul.mubr.bf16.gmra.mrb[72].mxu1 %v2042_v29  ;;  %v1840_v39 = vmul.f32 %v3752_v21, %v4911_v13  ;;  %v1901_v49 = vmul.f32 %v4962_v16, %v1837_v30  ;;  %v1841_v60 = vmul.f32 %v3752_v21, %v4916_v17  ;;  %v3724_v63 = vld [vmem:[#allocation11 + $0xb0] ss:$12 sps:$4 sm:$0xff]  }
 0x49d   : > { %v1902_v35 = vmul.f32 %v4965_v54, %v1838_v47  ;;  %v1839_v59 = vmul.f32 %v3752_v21, %v4908_v15  ;;  %v1900_v46 = vmul.f32 %v4970_v51, %v1836_v38  ;;  %3332 = vmatpush3.bf16.msra.mxu0 %v3711_v19  ;;  %v5125_v38 = vld [vmem:[#allocation5 + $0x4] ss:$0 sm:$0xff] }
 0x49e   : > { %v1904_v7 = vmul.f32 %v4962_v16, %v1840_v39  ;;  %v1905_v50 = vmul.f32 %v4965_v54, %v1841_v60  ;;  %v1965_v13 = vadd.f32 %v4975_v56, %v1901_v49  ;;  %3333 = vmatprep.subr.bf16.mxu0 %v3715_v36 }
 0x49f   : > { %2266 = vmatmul.mubr.bf16.gmra.mrb[52].mxu0 %v2040_v10  ;;  %v1903_v41 = vmul.f32 %v4970_v51, %v1839_v59  ;;  %v1966_v17 = vadd.f32 %v4979_v28, %v1902_v35  ;;  %v1964_v24 = vadd.f32 %v4983_v52, %v1900_v46 }
 0x4a0   : > { %v1968_v62 = vadd.f32 %v4975_v56, %v1904_v7  ;;  %v1969_v55 = vadd.f32 %v4979_v28, %v1905_v50 }
 0x4a1   : > { %v3754_v22 = vpop.eup %3753  ;;  %v1967_v15 = vadd.f32 %v4983_v52, %v1903_v41  ;;  %3334 = vmatpush3.bf16.msra.mxu0 %v3715_v36 }
 0x4a2   : > { %v3756_v53 = vpop.eup %3755  ;;  %v2044_v45 = vpack.c.bf16 %v1968_v62, %v1965_v13  ;;  %v2045_v61 = vpack.c.bf16 %v1969_v55, %v1966_v17  ;;  %v1843_v40 = vmul.f32 %v3754_v22, %v4932_v11  ;;  %v1844_v48 = vmul.f32 %v3754_v22, %v4935_v42  ;;  %3335 = vmatprep.subr.bf16.mxu0 %v3719_v1 }
 0x4a3   : > { %v1846_v0 = vmul.f32 %v3756_v53, %v4941_v14  ;;  %v1847_v3 = vmul.f32 %v3756_v53, %v5364_v8  ;;  %v1842_v2 = vmul.f32 %v3754_v22, %v5365_v44  ;;  %v1845_v23 = vmul.f32 %v3756_v53, %v5366_v31 }
 0x4a4   : > { %2273 = vmatprep.mubr.bf16.mxu0 %v2044_v45  ;;  %3321 = vmatprep.mubr.bf16.mxu1 %v2045_v61  ;;  %v1907_v26 = vmul.f32 %v4962_v16, %v1843_v40  ;;  %v1908_v6 = vmul.f32 %v4965_v54, %v1844_v48  ;;  %v2043_v37 = vpack.c.bf16 %v1967_v15, %v1964_v24 }
 0x4a5   : > { %v1910_v11 = vmul.f32 %v4962_v16, %v1846_v0  ;;  %v1911_v42 = vmul.f32 %v4965_v54, %v1847_v3  ;;  %v1906_v9 = vmul.f32 %v4970_v51, %v1842_v2  ;;  %v1909_v14 = vmul.f32 %v4970_v51, %v1845_v23  ;;  %3336 = vmatpush3.bf16.msra.mxu0 %v3719_v1 }
 0x4a6   : > { %v1971_v58 = vadd.f32 %v4975_v56, %v1907_v26  ;;  %v1972_v57 = vadd.f32 %v4979_v28, %v1908_v6  ;;  %v5367_v54 = vmov 0   ;;  %3337 = vmatprep.subr.bf16.mxu0 %v3723_v27 }
 0x4a7   : > { %2274 = vmatmul.mubr.bf16.gmra.mrb[56].mxu0 %v2043_v37  ;;  %v1974_v5 = vadd.f32 %v4975_v56, %v1910_v11  ;;  %v1975_v34 = vadd.f32 %v4979_v28, %v1911_v42  ;;  %v1973_v4 = vadd.f32 %v4983_v52, %v1909_v14  ;;  %v1970_v16 = vadd.f32 %v4983_v52, %v1906_v9  ;;  %v3712_v56 = vld [vmem:[#allocation11 + $0x78] ss:$12 sps:$4 sm:$0xff]   ;;  %v3716_v28 = vld [vmem:[#allocation11 + $0x90] ss:$12 sps:$4 sm:$0xff]  }
 0x4a8   : > { %2584 = vmatpush1.bf16.msra.mxu1 %v3712_v56  ;;  %v3722_v52 = vld [vmem:[#allocation11 + $0xac] ss:$12 sps:$4 sm:$0xff]  }
 0x4a9   : > { %v2047_v20 = vpack.c.bf16 %v1974_v5, %v1971_v58  ;;  %v2048_v43 = vpack.c.bf16 %v1975_v34, %v1972_v57  ;;  %v2046_v51 = vpack.c.bf16 %v1973_v4, %v1970_v16  ;;  %2585 = vmatprep.subr.bf16.mxu1 %v3718_v18  ;;  %3338 = vmatpush3.bf16.msra.mxu0 %v3723_v27 }
 0x4aa   : > { %3339 = vmatprep.subr.bf16.mxu0 %v3724_v63 }
 0x4ab   : > { %2281 = vmatprep.mubr.bf16.mxu0 %v2047_v20  ;;  %3322 = vmatmul.mubr.bf16.gmra.mrb[76].mxu1 %v2048_v43 }
 0x4ac   : > { %2605 = vmatprep.mubr.bf16.mxu1 %v5367_v54  ;;  %2586 = vmatpush1.bf16.msra.mxu1 %v3716_v28 }
 0x4ad   : > { %2587 = vmatprep.subr.bf16.mxu1 %v3722_v52  ;;  %3340 = vmatpush3.bf16.msra.mxu0 %v3724_v63 }
 0x4af   : > { %2282 = vmatmul.mubr.bf16.gmra.mrb[60].mxu0 %v2046_v51 }
 0x4b0   : > { %2588 = vmatpush1.bf16.msra.mxu1 %v3720_v33 }
 0x549   : > { %v3213_v32 = vpop.f32.mrb[32].mxu0 }
 0x54a   : > { %v3214_v29 = vpop.f32.mrb[33].mxu0 }
 0x54b   : > { %v3215_v30 = vadd.f32 %v3214_v29, %v3213_v32  ;;  %v3216_v47 = vpop.f32.mrb[34].mxu0 }
 0x54c   : > { %v3217_v21 = vpop.f32.mrb[35].mxu0 }
 0x54d   : > { %v3218_v25 = vadd.f32 %v3217_v21, %v3216_v47  ;;  %v2228_v49 = vadd.f32 %v3215_v30, %v5125_v38 }
 0x54f   : > { %v2231_v50 = vadd.f32 %v3218_v25, %v5125_v38 }
 0x551   : > { %v3311_v39 = vpop.f32.mrb[64].mxu1 }
 0x552   : > { %v3219_v60 = vpop.f32.mrb[36].mxu0  ;;  %v2324_v10 = vpop.f32.mrb[65].mxu1 }
 0x553   : > { %v2325_v35 = vadd.f32 %v2324_v10, %v2228_v49  ;;  %v3220_v59 = vpop.f32.mrb[37].mxu0  ;;  %v3312_v7 = vpop.f32.mrb[66].mxu1 }
 0x554   : > { %v3221_v46 = vadd.f32 %v3220_v59, %v3219_v60  ;;  %v3222_v41 = vpop.f32.mrb[38].mxu0  ;;  %v2327_v13 = vpop.f32.mrb[67].mxu1 }
 0x555   : > { %v2328_v62 = vadd.f32 %v2327_v13, %v2231_v50  ;;  %v3223_v17 = vpop.f32.mrb[39].mxu0 }
 0x556   : > { %v2236_v55 = vadd.f32 %v3221_v46, %v5125_v38  ;;  %v3224_v22 = vadd.f32 %v3223_v17, %v3222_v41 }
 0x557   : > { %v2421_v15 = vpack.c.bf16 %v2328_v62, %v2325_v35 }
 0x558   : > { %v2333_v53 = vadd.f32 %v3311_v39, %v2236_v55  ;;  %v2239_v45 = vadd.f32 %v3224_v22, %v5125_v38 }
 0x559   : > { %2606 = vmatmul.mubr.bf16.vlgmr.msra.gmra.mrb[80].mxu1 %v2421_v15  ;;  %3341 = vmatprep.mubr.bf16.mxu0 %v2421_v15 }
 0x55a   : > { %v2336_v61 = vadd.f32 %v3312_v7, %v2239_v45  ;;  %v3225_v40 = vpop.f32.mrb[40].mxu0  ;;  %2615 = vmatprep.mubr.bf16.mxu1 %v5367_v54 }
 0x55b   : > { %v3226_v48 = vpop.f32.mrb[41].mxu0 }
 0x55c   : > { %v2422_v24 = vpack.c.bf16 %v2336_v61, %v2333_v53  ;;  %v3227_v0 = vadd.f32 %v3226_v48, %v3225_v40  ;;  %v3228_v8 = vpop.f32.mrb[42].mxu0 }
 0x55d   : > { %v3229_v3 = vpop.f32.mrb[43].mxu0 }
 0x55e   : > { %v3230_v44 = vadd.f32 %v3229_v3, %v3228_v8  ;;  %3342 = vmatmul.mubr.bf16.vlgmr.msra.gmra.mrb[64].mxu0 %v2422_v24  ;;  %v2244_v2 = vadd.f32 %v3227_v0, %v5125_v38 }
 0x55f   : > { %v3315_v26 = vpop.f32.mrb[68].mxu1 }
 0x560   : > { %v2340_v6 = vpop.f32.mrb[69].mxu1  ;;  %v2247_v31 = vadd.f32 %v3230_v44, %v5125_v38 }
 0x561   : > { %v2341_v23 = vadd.f32 %v2340_v6, %v2244_v2  ;;  %v3316_v37 = vpop.f32.mrb[70].mxu1  ;;  %2616 = vmatmul.mubr.bf16.gmra.mrb[84].mxu1 %v2422_v24 }
 0x562   : > { %v3231_v11 = vpop.f32.mrb[44].mxu0  ;;  %v2343_v42 = vpop.f32.mrb[71].mxu1  ;;  %2625 = vmatprep.mubr.bf16.mxu1 %v5367_v54 }
 0x563   : > { %v2344_v9 = vadd.f32 %v2343_v42, %v2247_v31  ;;  %v3232_v14 = vpop.f32.mrb[45].mxu0 }
 0x564   : > { %v3233_v58 = vadd.f32 %v3232_v14, %v3231_v11  ;;  %v3234_v5 = vpop.f32.mrb[46].mxu0 }
 0x565   : > { %v2423_v57 = vpack.c.bf16 %v2344_v9, %v2341_v23  ;;  %v3235_v34 = vpop.f32.mrb[47].mxu0 }
 0x566   : > { %v2252_v20 = vadd.f32 %v3233_v58, %v5125_v38  ;;  %v3236_v43 = vadd.f32 %v3235_v34, %v3234_v5  ;;  %v2420_v58 = vld [vmem:[#allocation5 + $0x5] ss:$8 sm:$0x7]  ;;  %v5368_v5 = vld [vmem:[#allocation19_spill] sm:$0xff] }
 0x567   : > { %3345 = vmatprep.mubr.bf16.mxu0 %v2423_v57  ;;  %v5369_v34 = vld [vmem:[#allocation20_spill] sm:$0xff] }
 0x568   : > { %v2349_v4 = vadd.f32 %v3315_v26, %v2252_v20  ;;  %v2255_v16 = vadd.f32 %v3236_v43, %v5125_v38  ;;  %v5154_v20 = vrot.slane %v2420_v58, %v5369_v34 }
 0x569   : > { %2626 = vmatmul.mubr.bf16.gmra.mrb[88].mxu1 %v2423_v57  ;;  %v5151_v57 = vrot.slane %v2420_v58, %v5368_v5 }
 0x56a   : > { %v2352_v51 = vadd.f32 %v3316_v37, %v2255_v16  ;;  %v3237_v19 = vpop.f32.mrb[48].mxu0  ;;  %2635 = vmatprep.mubr.bf16.mxu1 %v5367_v54 }
 0x56b   : > { %v3238_v56 = vpop.f32.mrb[49].mxu0 }
 0x56c   : > { %v3239_v12 = vadd.f32 %v3238_v56, %v3237_v19  ;;  %v3240_v36 = vpop.f32.mrb[50].mxu0  ;;  %v2424_v28 = vpack.c.bf16 %v2352_v51, %v2349_v4  ;;  %v5370_v19 = vld [vmem:[#allocation21_spill] sm:$0xff] }
 0x56d   : > { %v3241_v18 = vpop.f32.mrb[51].mxu0  ;;  %v5159_v56 = vrot.slane %v2420_v58, %v5370_v19 }
 0x56e   : > { %v3242_v1 = vadd.f32 %v3241_v18, %v3240_v36  ;;  %3346 = vmatmul.mubr.bf16.gmra.mrb[68].mxu0 %v2424_v28  ;;  %v2260_v52 = vadd.f32 %v3239_v12, %v5125_v38 }
 0x56f   : > { %v3319_v33 = vpop.f32.mrb[72].mxu1 }
 0x570   : > { %v2356_v27 = vpop.f32.mrb[73].mxu1  ;;  %v2263_v63 = vadd.f32 %v3242_v1, %v5125_v38 }
 0x571   : > { %v2357_v32 = vadd.f32 %v2356_v27, %v2260_v52  ;;  %v3320_v29 = vpop.f32.mrb[74].mxu1  ;;  %2636 = vmatmul.mubr.bf16.gmra.mrb[92].mxu1 %v2424_v28 }
 0x572   : > { %v3243_v30 = vpop.f32.mrb[52].mxu0  ;;  %v2359_v47 = vpop.f32.mrb[75].mxu1  ;;  %2645 = vmatprep.mubr.bf16.mxu1 %v5367_v54 }
 0x573   : > { %v2360_v21 = vadd.f32 %v2359_v47, %v2263_v63  ;;  %v3244_v25 = vpop.f32.mrb[53].mxu0 }
 0x574   : > { %v3245_v39 = vadd.f32 %v3244_v25, %v3243_v30  ;;  %v3246_v49 = vpop.f32.mrb[54].mxu0 }
 0x575   : > { %v2425_v60 = vpack.c.bf16 %v2360_v21, %v2357_v32  ;;  %v3247_v10 = vpop.f32.mrb[55].mxu0 }
 0x576   : > { %v2268_v35 = vadd.f32 %v3245_v39, %v5125_v38  ;;  %v3248_v59 = vadd.f32 %v3247_v10, %v3246_v49 }
 0x577   : > { %3349 = vmatprep.mubr.bf16.mxu0 %v2425_v60 }
 0x578   : > { %v2365_v7 = vadd.f32 %v3319_v33, %v2268_v35  ;;  %v2271_v50 = vadd.f32 %v3248_v59, %v5125_v38 }
 0x579   : > { %2646 = vmatmul.mubr.bf16.gmra.mrb[96].mxu1 %v2425_v60 }
 0x57a   : > { %v2368_v46 = vadd.f32 %v3320_v29, %v2271_v50  ;;  %v3249_v41 = vpop.f32.mrb[56].mxu0  ;;  %2655 = vmatprep.mubr.bf16.mxu1 %v5367_v54 }
 0x57b   : > { %v3250_v13 = vpop.f32.mrb[57].mxu0 }
 0x57c   : > { %v3251_v62 = vadd.f32 %v3250_v13, %v3249_v41  ;;  %v3252_v17 = vpop.f32.mrb[58].mxu0  ;;  %v2426_v55 = vpack.c.bf16 %v2368_v46, %v2365_v7 }
 0x57d   : > { %v3253_v22 = vpop.f32.mrb[59].mxu0 }
 0x57e   : > { %v3254_v15 = vadd.f32 %v3253_v22, %v3252_v17  ;;  %3350 = vmatmul.mubr.bf16.gmra.mrb[72].mxu0 %v2426_v55  ;;  %v3323_v53 = vpop.f32.mrb[76].mxu1  ;;  %v2276_v45 = vadd.f32 %v3251_v62, %v5125_v38 }
 0x57f   : > { %v2372_v61 = vpop.f32.mrb[77].mxu1 }
 0x580   : > { %v2373_v40 = vadd.f32 %v2372_v61, %v2276_v45  ;;  %v3324_v48 = vpop.f32.mrb[78].mxu1  ;;  %v2279_v24 = vadd.f32 %v3254_v15, %v5125_v38 }
 0x581   : > { %2656 = vmatmul.mubr.bf16.gmra.mrb[100].mxu1 %v2426_v55  ;;  %v2375_v0 = vpop.f32.mrb[79].mxu1 }
 0x582   : > { %v3255_v8 = vpop.f32.mrb[60].mxu0  ;;  %v2376_v3 = vadd.f32 %v2375_v0, %v2279_v24  ;;  %2665 = vmatprep.mubr.bf16.mxu1 %v5367_v54 }
 0x583   : > { %v3256_v44 = vpop.f32.mrb[61].mxu0 }
 0x584   : > { %v2427_v2 = vpack.c.bf16 %v2376_v3, %v2373_v40  ;;  %v3257_v26 = vadd.f32 %v3256_v44, %v3255_v8  ;;  %v3258_v6 = vpop.f32.mrb[62].mxu0 }
 0x585   : > { %v3259_v31 = vpop.f32.mrb[63].mxu0 }
 0x586   : > { %v2284_v23 = vadd.f32 %v3257_v26, %v5125_v38  ;;  %v3260_v37 = vadd.f32 %v3259_v31, %v3258_v6  ;;  %3353 = vmatprep.mubr.bf16.mxu0 %v2427_v2 }
 0x588   : > { %v2381_v11 = vadd.f32 %v3323_v53, %v2284_v23  ;;  %v2287_v42 = vadd.f32 %v3260_v37, %v5125_v38 }
 0x589   : > { %2666 = vmatmul.mubr.bf16.gmra.mrb[104].mxu1 %v2427_v2 }
 0x58a   : > { %v2384_v9 = vadd.f32 %v3324_v48, %v2287_v42  ;;  %2675 = vmatprep.mubr.bf16.mxu1 %v5367_v54 }
 0x58c   : > { %v2428_v14 = vpack.c.bf16 %v2384_v9, %v2381_v11 }
 0x58e   : > { %3354 = vmatmul.mubr.bf16.gmra.mrb[76].mxu0 %v2428_v14 }
 0x591   : > { %2676 = vmatmul.mubr.bf16.gmra.mrb[108].mxu1 %v2428_v14 }
 0x62c   : > { %v2607_v43 = vpop.f32.mrb[80].mxu1 }
 0x62d   : > { %v2608_v4 = vadd.f32 %v2607_v43, %v5151_v57  ;;  %v2609_v16 = vpop.f32.mrb[81].mxu1 }
 0x62e   : > { %v2610_v38 = vadd.f32 %v2609_v16, %v5154_v20  ;;  %v2611_v51 = vpop.f32.mrb[82].mxu1 }
 0x62f   : > { %2783 = vst [vmem:[%s5163_s28] sm:$0xff] %v2608_v4  ;;  %v2612_v54 = vadd.f32 %v2611_v51, %v5151_v57  ;;  %v2613_v12 = vpop.f32.mrb[83].mxu1 }
 0x630   : > { %2784 = vst [vmem:[%s5163_s28 + $0x8] sm:$0xff] %v2610_v38  ;;  %v2614_v36 = vadd.f32 %v2613_v12, %v5154_v20 }
 0x631   : > { %2786 = vst [vmem:[%s5163_s28 + $0x18] sm:$0xff] %v2612_v54  ;;  %v3343_v28 = vpop.f32.mrb[64].mxu0 }
 0x632   : > { %2787 = vst [vmem:[%s5163_s28 + $0x20] sm:$0xff] %v2614_v36  ;;  %v2729_v18 = vadd.f32 %v3343_v28, %v5159_v56  ;;  %v2720_v1 = vpop.f32.mrb[65].mxu0 }
 0x633   : > { %v2721_v52 = vadd.f32 %v2720_v1, %v5159_v56  ;;  %v3344_v33 = vpop.f32.mrb[66].mxu0 }
 0x634   : > { %2791 = vst [vmem:[%s5163_s28 + $0x40] sm:$0xff] %v2729_v18  ;;  %v2732_v27 = vadd.f32 %v3344_v33, %v5159_v56  ;;  %v2617_v63 = vpop.f32.mrb[84].mxu1  ;;  %v2723_v32 = vpop.f32.mrb[67].mxu0 }
 0x635   : > { %2785 = vst [vmem:[%s5163_s28 + $0x10] sm:$0xff] %v2721_v52  ;;  %v2618_v29 = vadd.f32 %v2617_v63, %v5151_v57  ;;  %v2724_v30 = vadd.f32 %v2723_v32, %v5159_v56  ;;  %v2619_v47 = vpop.f32.mrb[85].mxu1 }
 0x636   : > { %2794 = vst [vmem:[%s5163_s28 + $0x58] sm:$0xff] %v2732_v27  ;;  %v2620_v21 = vadd.f32 %v2619_v47, %v5154_v20  ;;  %v2621_v25 = vpop.f32.mrb[86].mxu1 }
 0x637   : > { %2789 = vst [vmem:[%s5163_s28 + $0x30] sm:$0xff] %v2618_v29  ;;  %2788 = vst [vmem:[%s5163_s28 + $0x28] sm:$0xff] %v2724_v30  ;;  %v2622_v39 = vadd.f32 %v2621_v25, %v5151_v57  ;;  %v2623_v49 = vpop.f32.mrb[87].mxu1 }
 0x638   : > { %2790 = vst [vmem:[%s5163_s28 + $0x38] sm:$0xff] %v2620_v21  ;;  %v2624_v60 = vadd.f32 %v2623_v49, %v5154_v20 }
 0x639   : > { %2792 = vst [vmem:[%s5163_s28 + $0x48] sm:$0xff] %v2622_v39 }
 0x63a   : > { %2793 = vst [vmem:[%s5163_s28 + $0x50] sm:$0xff] %v2624_v60 }
 0x63c   : > { %v2627_v10 = vpop.f32.mrb[88].mxu1 }
 0x63d   : > { %v2628_v35 = vadd.f32 %v2627_v10, %v5151_v57  ;;  %v2629_v59 = vpop.f32.mrb[89].mxu1 }
 0x63e   : > { %v2630_v7 = vadd.f32 %v2629_v59, %v5154_v20  ;;  %v2631_v50 = vpop.f32.mrb[90].mxu1 }
 0x63f   : > { %2795 = vst [vmem:[%s5163_s28 + $0x60] sm:$0xff] %v2628_v35  ;;  %v2632_v46 = vadd.f32 %v2631_v50, %v5151_v57  ;;  %v2633_v41 = vpop.f32.mrb[91].mxu1 }
 0x640   : > { %2796 = vst [vmem:[%s5163_s28 + $0x68] sm:$0xff] %v2630_v7  ;;  %v2634_v13 = vadd.f32 %v2633_v41, %v5154_v20 }
 0x641   : > { %2798 = vst [vmem:[%s5163_s28 + $0x78] sm:$0xff] %v2632_v46  ;;  %v3347_v62 = vpop.f32.mrb[68].mxu0 }
 0x642   : > { %2799 = vst [vmem:[%s5163_s28 + $0x80] sm:$0xff] %v2634_v13  ;;  %v2745_v17 = vadd.f32 %v3347_v62, %v5159_v56  ;;  %v2736_v55 = vpop.f32.mrb[69].mxu0 }
 0x643   : > { %v2737_v22 = vadd.f32 %v2736_v55, %v5159_v56  ;;  %v3348_v15 = vpop.f32.mrb[70].mxu0 }
 0x644   : > { %2803 = vst [vmem:[%s5163_s28 + $0xa0] sm:$0xff] %v2745_v17  ;;  %v2748_v53 = vadd.f32 %v3348_v15, %v5159_v56  ;;  %v2637_v45 = vpop.f32.mrb[92].mxu1  ;;  %v2739_v61 = vpop.f32.mrb[71].mxu0 }
 0x645   : > { %2797 = vst [vmem:[%s5163_s28 + $0x70] sm:$0xff] %v2737_v22  ;;  %v2638_v40 = vadd.f32 %v2637_v45, %v5151_v57  ;;  %v2740_v48 = vadd.f32 %v2739_v61, %v5159_v56  ;;  %v2639_v24 = vpop.f32.mrb[93].mxu1 }
 0x646   : > { %2806 = vst [vmem:[%s5163_s28 + $0xb8] sm:$0xff] %v2748_v53  ;;  %v2640_v0 = vadd.f32 %v2639_v24, %v5154_v20  ;;  %v2641_v8 = vpop.f32.mrb[94].mxu1 }
 0x647   : > { %2801 = vst [vmem:[%s5163_s28 + $0x90] sm:$0xff] %v2638_v40  ;;  %2800 = vst [vmem:[%s5163_s28 + $0x88] sm:$0xff] %v2740_v48  ;;  %v2642_v3 = vadd.f32 %v2641_v8, %v5151_v57  ;;  %v2643_v44 = vpop.f32.mrb[95].mxu1 }
 0x648   : > { %2802 = vst [vmem:[%s5163_s28 + $0x98] sm:$0xff] %v2640_v0  ;;  %v2644_v2 = vadd.f32 %v2643_v44, %v5154_v20 }
 0x649   : > { %2804 = vst [vmem:[%s5163_s28 + $0xa8] sm:$0xff] %v2642_v3 }
 0x64a   : > { %2805 = vst [vmem:[%s5163_s28 + $0xb0] sm:$0xff] %v2644_v2 }
 0x64c   : > { %v2647_v26 = vpop.f32.mrb[96].mxu1 }
 0x64d   : > { %v2648_v6 = vadd.f32 %v2647_v26, %v5151_v57  ;;  %v2649_v31 = vpop.f32.mrb[97].mxu1 }
 0x64e   : > { %v2650_v23 = vadd.f32 %v2649_v31, %v5154_v20  ;;  %v2651_v37 = vpop.f32.mrb[98].mxu1 }
 0x64f   : > { %2807 = vst [vmem:[%s5163_s28 + $0xc0] sm:$0xff] %v2648_v6  ;;  %v2652_v11 = vadd.f32 %v2651_v37, %v5151_v57  ;;  %v2653_v42 = vpop.f32.mrb[99].mxu1 }
 0x650   : > { %2808 = vst [vmem:[%s5163_s28 + $0xc8] sm:$0xff] %v2650_v23  ;;  %v2654_v9 = vadd.f32 %v2653_v42, %v5154_v20 }
 0x651   : > { %2810 = vst [vmem:[%s5163_s28 + $0xd8] sm:$0xff] %v2652_v11  ;;  %v3351_v14 = vpop.f32.mrb[72].mxu0 }
 0x652   : > { %2811 = vst [vmem:[%s5163_s28 + $0xe0] sm:$0xff] %v2654_v9  ;;  %v2761_v58 = vadd.f32 %v3351_v14, %v5159_v56  ;;  %v2752_v5 = vpop.f32.mrb[73].mxu0 }
 0x653   : > { %v2753_v34 = vadd.f32 %v2752_v5, %v5159_v56  ;;  %v3352_v43 = vpop.f32.mrb[74].mxu0 }
 0x654   : > { %2815 = vst [vmem:[%s5163_s28 + $0x100] sm:$0xff] %v2761_v58  ;;  %v2764_v4 = vadd.f32 %v3352_v43, %v5159_v56  ;;  %v2657_v16 = vpop.f32.mrb[100].mxu1  ;;  %v2755_v38 = vpop.f32.mrb[75].mxu0 }
 0x655   : > { %2809 = vst [vmem:[%s5163_s28 + $0xd0] sm:$0xff] %v2753_v34  ;;  %v2658_v51 = vadd.f32 %v2657_v16, %v5151_v57  ;;  %v2756_v19 = vadd.f32 %v2755_v38, %v5159_v56  ;;  %v2659_v54 = vpop.f32.mrb[101].mxu1 }
 0x656   : > { %2818 = vst [vmem:[%s5163_s28 + $0x118] sm:$0xff] %v2764_v4  ;;  %v2660_v12 = vadd.f32 %v2659_v54, %v5154_v20  ;;  %v2661_v36 = vpop.f32.mrb[102].mxu1 }
 0x657   : > { %2813 = vst [vmem:[%s5163_s28 + $0xf0] sm:$0xff] %v2658_v51  ;;  %2812 = vst [vmem:[%s5163_s28 + $0xe8] sm:$0xff] %v2756_v19  ;;  %v2662_v28 = vadd.f32 %v2661_v36, %v5151_v57  ;;  %v2663_v18 = vpop.f32.mrb[103].mxu1 }
 0x658   : > { %2814 = vst [vmem:[%s5163_s28 + $0xf8] sm:$0xff] %v2660_v12  ;;  %v2664_v1 = vadd.f32 %v2663_v18, %v5154_v20 }
 0x659   : > { %2816 = vst [vmem:[%s5163_s28 + $0x108] sm:$0xff] %v2662_v28 }
 0x65a   : > { %2817 = vst [vmem:[%s5163_s28 + $0x110] sm:$0xff] %v2664_v1 }
 0x65c   : > { %v2667_v52 = vpop.f32.mrb[104].mxu1 }
 0x65d   : > { %v2668_v33 = vadd.f32 %v2667_v52, %v5151_v57  ;;  %v2669_v27 = vpop.f32.mrb[105].mxu1 }
 0x65e   : > { %v2670_v63 = vadd.f32 %v2669_v27, %v5154_v20  ;;  %v2671_v32 = vpop.f32.mrb[106].mxu1 }
 0x65f   : > { %2819 = vst [vmem:[%s5163_s28 + $0x120] sm:$0xff] %v2668_v33  ;;  %v2672_v29 = vadd.f32 %v2671_v32, %v5151_v57  ;;  %v2673_v30 = vpop.f32.mrb[107].mxu1 }
 0x660   : > { %2820 = vst [vmem:[%s5163_s28 + $0x128] sm:$0xff] %v2670_v63  ;;  %v2674_v47 = vadd.f32 %v2673_v30, %v5154_v20 }
 0x661   : > { %2822 = vst [vmem:[%s5163_s28 + $0x138] sm:$0xff] %v2672_v29  ;;  %v3355_v21 = vpop.f32.mrb[76].mxu0 }
 0x662   : > { %2823 = vst [vmem:[%s5163_s28 + $0x140] sm:$0xff] %v2674_v47  ;;  %v2777_v25 = vadd.f32 %v3355_v21, %v5159_v56  ;;  %v2768_v39 = vpop.f32.mrb[77].mxu0 }
 0x663   : > { %v2769_v49 = vadd.f32 %v2768_v39, %v5159_v56  ;;  %v3356_v60 = vpop.f32.mrb[78].mxu0 }
 0x664   : > { %2827 = vst [vmem:[%s5163_s28 + $0x160] sm:$0xff] %v2777_v25  ;;  %v2780_v10 = vadd.f32 %v3356_v60, %v5159_v56  ;;  %v2677_v35 = vpop.f32.mrb[108].mxu1  ;;  %v2771_v59 = vpop.f32.mrb[79].mxu0 }
 0x665   : > { %2821 = vst [vmem:[%s5163_s28 + $0x130] sm:$0xff] %v2769_v49  ;;  %v2678_v7 = vadd.f32 %v2677_v35, %v5151_v57  ;;  %v2772_v50 = vadd.f32 %v2771_v59, %v5159_v56  ;;  %v2679_v46 = vpop.f32.mrb[109].mxu1 }
 0x666   : > { %2830 = vst [vmem:[%s5163_s28 + $0x178] sm:$0xff] %v2780_v10  ;;  %v2680_v41 = vadd.f32 %v2679_v46, %v5154_v20  ;;  %v2681_v13 = vpop.f32.mrb[110].mxu1 }
 0x667   : > { %2825 = vst [vmem:[%s5163_s28 + $0x150] sm:$0xff] %v2678_v7  ;;  %2824 = vst [vmem:[%s5163_s28 + $0x148] sm:$0xff] %v2772_v50  ;;  %v2682_v62 = vadd.f32 %v2681_v13, %v5151_v57  ;;  %v2683_v17 = vpop.f32.mrb[111].mxu1 }
 0x668   : > { %2826 = vst [vmem:[%s5163_s28 + $0x158] sm:$0xff] %v2680_v41  ;;  %v2684_v56 = vadd.f32 %v2683_v17, %v5154_v20 }
 0x669   : > { %2828 = vst [vmem:[%s5163_s28 + $0x168] sm:$0xff] %v2682_v62 }
 0x66a   : > { %2829 = vst [vmem:[%s5163_s28 + $0x170] sm:$0xff] %v2684_v56 }
 0x66b   : > { %3940 = shalt.err (!%p3937_p8)
}
 0x66c   : > { %s3941_s17 = scalar_lea.hbm %s5260_s12, 6144  ;;  %s3945_s16 = scalar_lea.hbm %s5316_s6, 12288 }
 0x66d   : > { %p3942_p6 = scmp.ne.s32.totalorder %s5260_s12, %s3941_s17  ;;  %p3946_p9 = scmp.lt.u32.totalorder %s5260_s12, %s5316_s6 }
 0x66e   : > { %p3947_p10 = scmp.lt.u32.totalorder %s3945_s16, %s3941_s17  ;;  %p3949_p11 = scmp.lt.u32.totalorder %s3941_s17, %s5260_s12 }
 0x66f   : > { %p3943_p0 = pnand %p3942_p6, %p5371_p13 }
 0x670   : > { %p3948_p12 = por %p3947_p10, %p3946_p9 }
 0x671   : > { %p3944_p2 = pneg %p3943_p0 }
 0x672   : > { %p3950_p5 = por %p3949_p11, %p3948_p12 }
 0x674   : > { %p3951_p7 = pnand %p3950_p5, %p3944_p2 }
 0x676   : > { %3954 = shalt.err (!%p3951_p7)
}
 0x677   : > { %s4023_s27 = smov 384   ;;  %s4024_s9 = smov 24  }
 0x678   : > { %3447 = dma.vmem_to_hbm [thread:$0]  (%p5371_p13), %s5264_s8, 6144, %s5260_s12, %s2832_s13, %s4023_s27, %s4023_s27, %s4024_s9  }
 0x679 PF: > { %s2861_s29 = sand.u32 1, %s3993_s21   ;;  %p5372_p4 = scmp.ne.s32.totalorder %s5340_s20, 0 }
 0x67a   : > { %p5373_p1 = scmp.ge.s32.totalorder %s4005_s24, 2  ;;  %s2862_s19 = scalar_lea.sflag [#allocation4], %s2861_s29 }
 0x67c   : > { %p3470_p3 = pnand %p5373_p1, %p5372_p4 }
 0x67e   : > { %3988 = dma.done.wait (!%p3470_p3), %s2862_s19, 6144  }
 0x67f   : > { %3990 = vsyncadd (!%p3470_p3), %s2862_s19, 4294961152  ;;  %p22_p8 = scmp.ge.s32.totalorder %s4217_s15, 4   ;;  %s5374_s21 = smov %s3997_s22 }
 0x680   : > { %s5375_s22 = smov %s4001_s23  ;;  %s5376_s23 = smov %s4229_s18 }
 0x681   : > { %s5377_s24 = smov %s4217_s15  ;;  %24 = sbr.rel (!%p22_p8) target bundleno = 8 (0x8), region = 113 }
 0x688   :  { %2867 = vsyncpa [#allocation3], 1 }
 0x689   :  { %2869 = vsyncpa [#allocation3 + $0x1], 1 }
 0x68a   :  { %2870 = vsyncpa [#allocation6], 1 }
 0x68b   :  { %2871 = vsyncpa [#allocation9], 1 }
 0x68c   :  { %2872 = vsyncpa [#allocation12], 1 }
 0x68d   :  { %2873 = vsyncpa [#allocation4], 1 }
 0x68e   :  { %2875 = vsyncpa [#allocation4 + $0x1], 1 }

</bundles_post_ra>
